<compile_context>
chip_gen: v7x
topology: tpu7x:2x2x1
jax: 0.10.0
libtpu: 0.0.40
codegen_flags: <defaults>
</compile_context>

<pallas_src>
import math
import functools

import jax
import jax.numpy as jnp
from jax import lax
from jax.experimental import pallas as pl
from jax.experimental.pallas import tpu as pltpu


# ----------------------------------------------------------------------------
# Fused kernel.  Grid = (batch, num_query_tiles).
# ----------------------------------------------------------------------------
def mha_fused_kernel(xq_ref, xf_ref, m_ref, wq_ref, bq_ref, wkv_ref, bkv_ref,
                     wo_ref, bo_ref, g_ref, bta_ref, o_ref, *rest,
                     num_heads, d_k, emit_attn):
    if emit_attn:
        a_ref, kv_ref = rest
    else:
        (kv_ref,) = rest

    D = xq_ref.shape[-1]

    # --- K/V projection once per batch element (qi == 0), kept in bf16 VMEM ---
    @pl.when(pl.program_id(1) == 0)
    def _():
        xf = xf_ref[0].astype(jnp.bfloat16)                    # (N, D)
        kv = (jnp.dot(xf, wkv_ref[...], preferred_element_type=jnp.float32)
              + bkv_ref[...])                                   # (N, 2D) fp32
        kv_ref[...] = kv.astype(jnp.bfloat16)

    # --- Q projection for this query tile (bf16 operands, fp32 accumulate) ---
    x_res = xq_ref[0].astype(jnp.float32)                       # residual (tq, D)
    q = (jnp.dot(xq_ref[0].astype(jnp.bfloat16), wq_ref[...],
                 preferred_element_type=jnp.float32)
         + bq_ref[...])                                          # (tq, D) fp32
    q = q * jnp.float32(1.0 / math.sqrt(d_k))                    # scale folded into q

    # --- mask -> additive bias, hoisted out of the head loop (fp32) ---
    mask_row = m_ref[0, 0]                                       # (1, N)
    bias = jnp.where(mask_row == 0, jnp.float32(-1e9), jnp.float32(0.0))

    # --- per-head attention, ctx accumulated straight into output projection ---
    y_acc = jnp.zeros((q.shape[0], D), jnp.float32)
    for h in range(num_heads):                                   # static unroll
        lo = h * d_k
        q_h = q[:, lo:lo + d_k].astype(jnp.bfloat16)             # (tq, d_k)
        k_h = kv_ref[:, lo:lo + d_k]                             # (N, d_k) bf16
        v_h = kv_ref[:, D + lo:D + lo + d_k]                     # (N, d_k) bf16

        # q @ k^T without an explicit transpose (contract last dims).
        scores = lax.dot_general(q_h, k_h, (((1,), (1,)), ((), ())),
                                 preferred_element_type=jnp.float32)   # (tq, N)
        scores = scores + bias
        scores = scores - jnp.max(scores, axis=-1, keepdims=True)
        e = jnp.exp(scores)
        s = jnp.sum(e, axis=-1, keepdims=True)
        inv = pl.reciprocal(s, approx=True)                      # EUP slot
        inv = inv * (jnp.float32(2.0) - s * inv)                 # Newton step -> exact-ish
        attn = e * inv                                           # rows sum to ~1

        if emit_attn:
            a_ref[0, h] = attn.astype(a_ref.dtype)

        ctx_h = jnp.dot(attn.astype(jnp.bfloat16), v_h,
                        preferred_element_type=jnp.float32)      # (tq, d_k)
        y_acc = y_acc + jnp.dot(ctx_h.astype(jnp.bfloat16),
                                wo_ref[lo:lo + d_k, :],
                                preferred_element_type=jnp.float32)

    # --- output bias, residual, LayerNorm (fp32, centered variance) ---
    y = y_acc + bo_ref[...] + x_res
    mean = jnp.mean(y, axis=-1, keepdims=True)
    yc = y - mean
    var = jnp.mean(yc * yc, axis=-1, keepdims=True)
    y_hat = yc * lax.rsqrt(var + jnp.float32(1e-5))              # LayerNorm eps
    o_ref[0] = (y_hat * g_ref[...] + bta_ref[...]).astype(o_ref.dtype)


# ----------------------------------------------------------------------------
# One-time parameter preparation (do NOT pay a concat per forward call).
# ----------------------------------------------------------------------------
def prepare_mha_params(params):
    return {
        "wq": params["wq"].astype(jnp.bfloat16),                         # (D, D)
        "bq": params["bq"].astype(jnp.float32),                          # (1, D)
        "wkv": jnp.concatenate([params["wk"], params["wv"]],
                               axis=1).astype(jnp.bfloat16),             # (D, 2D)
        "bkv": jnp.concatenate([params["bk"], params["bv"]],
                               axis=1).astype(jnp.float32),              # (1, 2D)
        "wo": params["wo"].astype(jnp.bfloat16),                         # (D, D)
        "bo": params["bo"].astype(jnp.float32),                          # (1, D)
        "gamma": params["gamma"].astype(jnp.float32),                    # (1, D)
        "beta": params["beta"].astype(jnp.float32),                      # (1, D)
    }


# ----------------------------------------------------------------------------
# Wrapper.
# ----------------------------------------------------------------------------
@functools.partial(jax.jit, static_argnames=("num_heads", "block_q", "return_attn"))
def multi_head_attention(x, prep, mask, *, num_heads, block_q=None, return_attn=True):
    B, N, D = x.shape
    d_k = D // num_heads
    tq = N if block_q is None else min(block_q, N)
    assert N % tq == 0, "seq_len must be divisible by block_q"
    n_q = N // tq

    kernel = functools.partial(mha_fused_kernel, num_heads=num_heads, d_k=d_k,
                               emit_attn=return_attn)

    xq_spec = pl.BlockSpec((1, tq, D), lambda b, qi: (b, qi, 0))
    xf_spec = pl.BlockSpec((1, N, D), lambda b, qi: (b, 0, 0))
    mask_spec = pl.BlockSpec((1, 1, 1, N), lambda b, qi: (b, 0, 0, 0))
    wq_spec = pl.BlockSpec((D, D), lambda b, qi: (0, 0))
    bq_spec = pl.BlockSpec((1, D), lambda b, qi: (0, 0))
    wkv_spec = pl.BlockSpec((D, 2 * D), lambda b, qi: (0, 0))
    bkv_spec = pl.BlockSpec((1, 2 * D), lambda b, qi: (0, 0))
    wo_spec = pl.BlockSpec((D, D), lambda b, qi: (0, 0))
    vec_spec = pl.BlockSpec((1, D), lambda b, qi: (0, 0))
    out_spec = pl.BlockSpec((1, tq, D), lambda b, qi: (b, qi, 0))
    attn_spec = pl.BlockSpec((1, num_heads, tq, N), lambda b, qi: (b, 0, qi, 0))

    out_shapes = [jax.ShapeDtypeStruct((B, N, D), x.dtype)]
    out_specs = [out_spec]
    if return_attn:
        # TODO(synk): store in bf16 (or drop) at production N — this O(B*H*N^2)
        # writeback is the dominant HBM store; kept in x.dtype to match the
        # PyTorch module's return contract.
        out_shapes.append(jax.ShapeDtypeStruct((B, num_heads, N, N), x.dtype))
        out_specs.append(attn_spec)

    results = pl.pallas_call(
        kernel,
        out_shape=tuple(out_shapes),
        grid_spec=pltpu.PrefetchScalarGridSpec(
            num_scalar_prefetch=0,
            grid=(B, n_q),
            in_specs=[xq_spec, xf_spec, mask_spec, wq_spec, bq_spec,
                      wkv_spec, bkv_spec, wo_spec, vec_spec, vec_spec, vec_spec],
            out_specs=tuple(out_specs),
            scratch_shapes=[pltpu.VMEM((N, 2 * D), jnp.bfloat16)],   # persistent K/V
        ),
        compiler_params=pltpu.CompilerParams(
            # qi axis is sequential ("arbitrary") so the K/V scratch computed at
            # qi==0 stays valid; batch axis is "parallel" (megacore on v7x).
            dimension_semantics=("parallel", "arbitrary"),
            # Explicit scoped-VMEM budget with headroom below v7x's 64 MiB.
            vmem_limit_bytes=48 * 1024 * 1024,
        ),
    )(x, x, mask, prep["wq"], prep["bq"], prep["wkv"], prep["bkv"],
      prep["wo"], prep["bo"], prep["gamma"], prep["beta"])

    if return_attn:
        return results[0], results[1]
    return results[0]


# ----------------------------------------------------------------------------
# Pure-JAX reference (mirrors the PyTorch module, dropout=0).
# ----------------------------------------------------------------------------
def mha_reference(x, params, mask, num_heads):
    B, N, D = x.shape
    d_k = D // num_heads
    q = x @ params["wq"] + params["bq"]
    k = x @ params["wk"] + params["bk"]
    v = x @ params["wv"] + params["bv"]

    def split_heads(t):
        return t.reshape(B, N, num_heads, d_k).transpose(0, 2, 1, 3)

    q, k, v = split_heads(q), split_heads(k), split_heads(v)
    scores = jnp.einsum("bhnd,bhmd->bhnm", q, k) / math.sqrt(d_k)
    scores = jnp.where(mask == 0, -1e9, scores)
    attn = jax.nn.softmax(scores, axis=-1)
    ctx = jnp.einsum("bhnm,bhmd->bhnd", attn, v)
    ctx = ctx.transpose(0, 2, 1, 3).reshape(B, N, D)
    out = ctx @ params["wo"] + params["bo"]
    y = x + out
    mean = jnp.mean(y, axis=-1, keepdims=True)
    var = jnp.mean((y - mean) ** 2, axis=-1, keepdims=True)
    y = (y - mean) / jnp.sqrt(var + 1e-5)
    y = y * params["gamma"] + params["beta"]
    return y, attn


if __name__ == "__main__":
    # Small shapes implied by the module: (batch, seq, d_model), heads | d_model.
    B, N, D, H = 2, 8, 32, 4

    key = jax.random.PRNGKey(0)
    keys = jax.random.split(key, 10)

    def init_lin(kw):
        # deterministic init; weights stored as (d_in, d_out)  (y = x @ W + b)
        return jax.random.normal(kw, (D, D), jnp.float32) * 0.05

    params = {
        "wq": init_lin(keys[0]), "bq": jax.random.normal(keys[1], (1, D)) * 0.01,
        "wk": init_lin(keys[2]), "bk": jax.random.normal(keys[3], (1, D)) * 0.01,
        "wv": init_lin(keys[4]), "bv": jax.random.normal(keys[5], (1, D)) * 0.01,
        "wo": init_lin(keys[6]), "bo": jax.random.normal(keys[7], (1, D)) * 0.01,
        "gamma": jnp.ones((1, D), jnp.float32),   # nn.LayerNorm defaults
        "beta": jnp.zeros((1, D), jnp.float32),
    }
    prep = prepare_mha_params(params)             # one-time weight prep (bf16, K|V concat)

    x = jax.random.normal(keys[8], (B, N, D), jnp.float32)
    # mask of shape (batch, 1, 1, seq) — last two key positions of batch 1 masked.
    mask = jnp.ones((B, 1, 1, N), jnp.float32).at[1, 0, 0, -2:].set(0.0)

    out, attn = multi_head_attention(x, prep, mask, num_heads=H)
    out = jax.block_until_ready(out)
    attn = jax.block_until_ready(attn)

    ref_out, ref_attn = mha_reference(x, params, mask, H)
    assert out.shape == (B, N, D) and attn.shape == (B, H, N, N)
    # Tolerances reflect bf16 MXU operands (fp32 accumulate); softmax rows are
    # normalized with a Newton-refined reciprocal so probabilities sum to ~1.
    assert jnp.allclose(out, ref_out, atol=2e-2, rtol=2e-2)
    assert jnp.allclose(attn, ref_attn, atol=2e-2, rtol=2e-2)

    print("KERNEL_OK")
</pallas_src>

<mosaic_0001>
module attributes {stable_mosaic.version = 11 : i64} {
  func.func @mha_fused_kernel(%arg0: i32, %arg1: i32, %arg2: memref<1x8x32xf32, #tpu.memory_space<vmem>>, %arg3: memref<1x8x32xf32, #tpu.memory_space<vmem>>, %arg4: memref<1x1x1x8xf32, #tpu.memory_space<vmem>>, %arg5: memref<32x32xbf16, #tpu.memory_space<vmem>>, %arg6: memref<1x32xf32, #tpu.memory_space<vmem>>, %arg7: memref<32x64xbf16, #tpu.memory_space<vmem>>, %arg8: memref<1x64xf32, #tpu.memory_space<vmem>>, %arg9: memref<32x32xbf16, #tpu.memory_space<vmem>>, %arg10: memref<1x32xf32, #tpu.memory_space<vmem>>, %arg11: memref<1x32xf32, #tpu.memory_space<vmem>>, %arg12: memref<1x32xf32, #tpu.memory_space<vmem>>, %arg13: memref<1x8x32xf32, #tpu.memory_space<vmem>>, %arg14: memref<1x4x8x8xf32, #tpu.memory_space<vmem>>, %arg15: memref<8x64xbf16, #tpu.memory_space<vmem>>) attributes {dimension_semantics = [#tpu.dimension_semantics<parallel>, #tpu.dimension_semantics<arbitrary>], iteration_bounds = array<i64: 2, 1>, scalar_prefetch = 0 : i64, scratch_operands = 1 : i64, tpu.core_type = #tpu.core_type<tc>, window_params = [{transform_indices = @transform_0, window_bounds = array<i64: 1, 8, 32>}, {transform_indices = @transform_1, window_bounds = array<i64: 1, 8, 32>}, {transform_indices = @transform_2, window_bounds = array<i64: 1, 1, 1, 8>}, {pipeline_mode = #tpu.pipeline_mode<synchronous>, transform_indices = @transform_3, window_bounds = array<i64: 32, 32>}, {pipeline_mode = #tpu.pipeline_mode<synchronous>, transform_indices = @transform_4, window_bounds = array<i64: 1, 32>}, {pipeline_mode = #tpu.pipeline_mode<synchronous>, transform_indices = @transform_5, window_bounds = array<i64: 32, 64>}, {pipeline_mode = #tpu.pipeline_mode<synchronous>, transform_indices = @transform_6, window_bounds = array<i64: 1, 64>}, {pipeline_mode = #tpu.pipeline_mode<synchronous>, transform_indices = @transform_7, window_bounds = array<i64: 32, 32>}, {pipeline_mode = #tpu.pipeline_mode<synchronous>, transform_indices = @transform_8, window_bounds = array<i64: 1, 32>}, {pipeline_mode = #tpu.pipeline_mode<synchronous>, transform_indices = @transform_9, window_bounds = array<i64: 1, 32>}, {pipeline_mode = #tpu.pipeline_mode<synchronous>, transform_indices = @transform_10, window_bounds = array<i64: 1, 32>}, {transform_indices = @transform_11, window_bounds = array<i64: 1, 8, 32>}, {transform_indices = @transform_12, window_bounds = array<i64: 1, 4, 8, 8>}]} {
    %c0_i32 = arith.constant 0 : i32
    %0 = arith.cmpi eq, %arg1, %c0_i32 : i32
    %1 = arith.extui %0 : i1 to i32
    %c0_i32_0 = arith.constant 0 : i32
    %2 = arith.cmpi ne, %1, %c0_i32_0 : i32
    scf.if %2 {
      %c0_87 = arith.constant 0 : index
      %c0_88 = arith.constant 0 : index
      %c0_89 = arith.constant 0 : index
      %172 = vector.load %arg3[%c0_87, %c0_88, %c0_89] : memref<1x8x32xf32, #tpu.memory_space<vmem>>, vector<1x8x32xf32>
      %173 = vector.shape_cast %172 : vector<1x8x32xf32> to vector<8x32xf32>
      %174 = arith.truncf %173 : vector<8x32xf32> to vector<8x32xbf16>
      %c0_90 = arith.constant 0 : index
      %c0_91 = arith.constant 0 : index
      %175 = vector.load %arg7[%c0_90, %c0_91] : memref<32x64xbf16, #tpu.memory_space<vmem>>, vector<32x64xbf16>
      %cst_92 = arith.constant dense<0.000000e+00> : vector<8x64xf32>
      %176 = tpu.matmul %174, %175, %cst_92 {dimension_numbers = #tpu.dot_dimension_numbers<[1], [0], [0], [1], [0, 0, 1, 1], [], []>} : vector<8x32xbf16>, vector<32x64xbf16>, vector<8x64xf32> -> vector<8x64xf32>
      %c0_93 = arith.constant 0 : index
      %c0_94 = arith.constant 0 : index
      %177 = vector.load %arg8[%c0_93, %c0_94] : memref<1x64xf32, #tpu.memory_space<vmem>>, vector<1x64xf32>
      %178 = vector.broadcast %177 : vector<1x64xf32> to vector<8x64xf32>
      %179 = arith.addf %176, %178 : vector<8x64xf32>
      %180 = arith.truncf %179 : vector<8x64xf32> to vector<8x64xbf16>
      %c0_95 = arith.constant 0 : index
      %c0_96 = arith.constant 0 : index
      %181 = vector.load %arg15[%c0_95, %c0_96] : memref<8x64xbf16, #tpu.memory_space<vmem>>, vector<8x64xbf16>
      tpu.vector_store %arg15[%c0_95, %c0_96], %180 {strides = array<i32>} : memref<8x64xbf16, #tpu.memory_space<vmem>>, vector<8x64xbf16>,
    } else {
    }
    %c0 = arith.constant 0 : index
    %c0_1 = arith.constant 0 : index
    %c0_2 = arith.constant 0 : index
    %3 = vector.load %arg2[%c0, %c0_1, %c0_2] : memref<1x8x32xf32, #tpu.memory_space<vmem>>, vector<1x8x32xf32>
    %4 = vector.shape_cast %3 : vector<1x8x32xf32> to vector<8x32xf32>
    %c0_3 = arith.constant 0 : index
    %c0_4 = arith.constant 0 : index
    %c0_5 = arith.constant 0 : index
    %5 = vector.load %arg2[%c0_3, %c0_4, %c0_5] : memref<1x8x32xf32, #tpu.memory_space<vmem>>, vector<1x8x32xf32>
    %6 = vector.shape_cast %5 : vector<1x8x32xf32> to vector<8x32xf32>
    %7 = arith.truncf %6 : vector<8x32xf32> to vector<8x32xbf16>
    %c0_6 = arith.constant 0 : index
    %c0_7 = arith.constant 0 : index
    %8 = vector.load %arg5[%c0_6, %c0_7] : memref<32x32xbf16, #tpu.memory_space<vmem>>, vector<32x32xbf16>
    %cst = arith.constant dense<0.000000e+00> : vector<8x32xf32>
    %9 = tpu.matmul %7, %8, %cst {dimension_numbers = #tpu.dot_dimension_numbers<[1], [0], [0], [1], [0, 0, 1, 1], [], []>} : vector<8x32xbf16>, vector<32x32xbf16>, vector<8x32xf32> -> vector<8x32xf32>
    %c0_8 = arith.constant 0 : index
    %c0_9 = arith.constant 0 : index
    %10 = vector.load %arg6[%c0_8, %c0_9] : memref<1x32xf32, #tpu.memory_space<vmem>>, vector<1x32xf32>
    %11 = vector.broadcast %10 : vector<1x32xf32> to vector<8x32xf32>
    %12 = arith.addf %9, %11 : vector<8x32xf32>
    %cst_10 = arith.constant 0.353553385 : f32
    %13 = vector.broadcast %cst_10 : f32 to vector<8x32xf32>
    %14 = arith.mulf %12, %13 : vector<8x32xf32>
    %c0_11 = arith.constant 0 : index
    %c0_12 = arith.constant 0 : index
    %c0_13 = arith.constant 0 : index
    %c0_14 = arith.constant 0 : index
    %15 = vector.load %arg4[%c0_11, %c0_12, %c0_13, %c0_14] : memref<1x1x1x8xf32, #tpu.memory_space<vmem>>, vector<1x1x1x8xf32>
    %16 = vector.shape_cast %15 : vector<1x1x1x8xf32> to vector<1x8xf32>
    %cst_15 = arith.constant 0.000000e+00 : f32
    %17 = vector.broadcast %cst_15 : f32 to vector<1x8xf32>
    %18 = arith.cmpf oeq, %16, %17 : vector<1x8xf32>
    %cst_16 = arith.constant -1.000000e+09 : f32
    %cst_17 = arith.constant 0.000000e+00 : f32
    %19 = vector.broadcast %cst_16 : f32 to vector<1x8xf32>
    %20 = vector.broadcast %cst_17 : f32 to vector<1x8xf32>
    %21 = arith.select %18, %19, %20 : vector<1x8xi1>, vector<1x8xf32>
    %cst_18 = arith.constant 0.000000e+00 : f32
    %22 = vector.broadcast %cst_18 : f32 to vector<8x32xf32>
    %23 = vector.extract_strided_slice %14 {offsets = [0, 0], sizes = [8, 8], strides = [1, 1]} : vector<8x32xf32> to vector<8x8xf32>
    %24 = arith.truncf %23 : vector<8x8xf32> to vector<8x8xbf16>
    %c0_19 = arith.constant 0 : index
    %c0_20 = arith.constant 0 : index
    %25 = vector.load %arg15[%c0_19, %c0_20] : memref<8x64xbf16, #tpu.memory_space<vmem>>, vector<8x8xbf16>
    %c0_21 = arith.constant 0 : index
    %c32 = arith.constant 32 : index
    %26 = vector.load %arg15[%c0_21, %c32] : memref<8x64xbf16, #tpu.memory_space<vmem>>, vector<8x8xbf16>
    %cst_22 = arith.constant dense<0.000000e+00> : vector<8x8xf32>
    %27 = tpu.matmul %24, %25, %cst_22 {dimension_numbers = #tpu.dot_dimension_numbers<[1], [1], [0], [0], [0, 0, 1, 0], [], []>} : vector<8x8xbf16>, vector<8x8xbf16>, vector<8x8xf32> -> vector<8x8xf32>
    %28 = vector.broadcast %21 : vector<1x8xf32> to vector<8x8xf32>
    %29 = arith.addf %27, %28 : vector<8x8xf32>
    %cst_23 = arith.constant dense<0xFF800000> : vector<8xf32>
    %30 = vector.multi_reduction <maximumf>, %29, %cst_23 [1] : vector<8x8xf32> to vector<8xf32>
    %31 = vector.shape_cast %30 : vector<8xf32> to vector<8x1xf32>
    %32 = vector.broadcast %31 : vector<8x1xf32> to vector<8x8xf32>
    %33 = arith.subf %29, %32 : vector<8x8xf32>
    %34 = math.exp %33 : vector<8x8xf32>
    %cst_24 = arith.constant dense<0.000000e+00> : vector<8xf32>
    %35 = vector.multi_reduction <add>, %34, %cst_24 [1] : vector<8x8xf32> to vector<8xf32>
    %36 = vector.shape_cast %35 : vector<8xf32> to vector<8x1xf32>
    %37 = tpu.reciprocal %36 {approx = true} : vector<8x1xf32> -> vector<8x1xf32>
    %38 = arith.mulf %36, %37 : vector<8x1xf32>
    %cst_25 = arith.constant 2.000000e+00 : f32
    %39 = vector.broadcast %cst_25 : f32 to vector<8x1xf32>
    %40 = arith.subf %39, %38 : vector<8x1xf32>
    %41 = arith.mulf %37, %40 : vector<8x1xf32>
    %42 = vector.broadcast %41 : vector<8x1xf32> to vector<8x8xf32>
    %43 = arith.mulf %34, %42 : vector<8x8xf32>
    %c0_26 = arith.constant 0 : index
    %c0_27 = arith.constant 0 : index
    %c0_28 = arith.constant 0 : index
    %c0_29 = arith.constant 0 : index
    %44 = vector.load %arg14[%c0_26, %c0_27, %c0_28, %c0_29] : memref<1x4x8x8xf32, #tpu.memory_space<vmem>>, vector<1x1x8x8xf32>
    %45 = vector.shape_cast %44 : vector<1x1x8x8xf32> to vector<8x8xf32>
    %46 = vector.shape_cast %43 : vector<8x8xf32> to vector<1x1x8x8xf32>
    tpu.vector_store %arg14[%c0_26, %c0_27, %c0_28, %c0_29], %46 {strides = array<i32>} : memref<1x4x8x8xf32, #tpu.memory_space<vmem>>, vector<1x1x8x8xf32>,
    %47 = arith.truncf %43 : vector<8x8xf32> to vector<8x8xbf16>
    %cst_30 = arith.constant dense<0.000000e+00> : vector<8x8xf32>
    %48 = tpu.matmul %47, %26, %cst_30 {dimension_numbers = #tpu.dot_dimension_numbers<[1], [0], [0], [1], [0, 0, 1, 1], [], []>} : vector<8x8xbf16>, vector<8x8xbf16>, vector<8x8xf32> -> vector<8x8xf32>
    %49 = arith.truncf %48 : vector<8x8xf32> to vector<8x8xbf16>
    %c0_31 = arith.constant 0 : index
    %c0_32 = arith.constant 0 : index
    %50 = vector.load %arg9[%c0_31, %c0_32] : memref<32x32xbf16, #tpu.memory_space<vmem>>, vector<8x32xbf16>
    %cst_33 = arith.constant dense<0.000000e+00> : vector<8x32xf32>
    %51 = tpu.matmul %49, %50, %cst_33 {dimension_numbers = #tpu.dot_dimension_numbers<[1], [0], [0], [1], [0, 0, 1, 1], [], []>} : vector<8x8xbf16>, vector<8x32xbf16>, vector<8x32xf32> -> vector<8x32xf32>
    %52 = arith.addf %22, %51 : vector<8x32xf32>
    %53 = vector.extract_strided_slice %14 {offsets = [0, 8], sizes = [8, 8], strides = [1, 1]} : vector<8x32xf32> to vector<8x8xf32>
    %54 = arith.truncf %53 : vector<8x8xf32> to vector<8x8xbf16>
    %c0_34 = arith.constant 0 : index
    %c8 = arith.constant 8 : index
    %55 = vector.load %arg15[%c0_34, %c8] : memref<8x64xbf16, #tpu.memory_space<vmem>>, vector<8x8xbf16>
    %c0_35 = arith.constant 0 : index
    %c40 = arith.constant 40 : index
    %56 = vector.load %arg15[%c0_35, %c40] : memref<8x64xbf16, #tpu.memory_space<vmem>>, vector<8x8xbf16>
    %cst_36 = arith.constant dense<0.000000e+00> : vector<8x8xf32>
    %57 = tpu.matmul %54, %55, %cst_36 {dimension_numbers = #tpu.dot_dimension_numbers<[1], [1], [0], [0], [0, 0, 1, 0], [], []>} : vector<8x8xbf16>, vector<8x8xbf16>, vector<8x8xf32> -> vector<8x8xf32>
    %58 = vector.broadcast %21 : vector<1x8xf32> to vector<8x8xf32>
    %59 = arith.addf %57, %58 : vector<8x8xf32>
    %cst_37 = arith.constant dense<0xFF800000> : vector<8xf32>
    %60 = vector.multi_reduction <maximumf>, %59, %cst_37 [1] : vector<8x8xf32> to vector<8xf32>
    %61 = vector.shape_cast %60 : vector<8xf32> to vector<8x1xf32>
    %62 = vector.broadcast %61 : vector<8x1xf32> to vector<8x8xf32>
    %63 = arith.subf %59, %62 : vector<8x8xf32>
    %64 = math.exp %63 : vector<8x8xf32>
    %cst_38 = arith.constant dense<0.000000e+00> : vector<8xf32>
    %65 = vector.multi_reduction <add>, %64, %cst_38 [1] : vector<8x8xf32> to vector<8xf32>
    %66 = vector.shape_cast %65 : vector<8xf32> to vector<8x1xf32>
    %67 = tpu.reciprocal %66 {approx = true} : vector<8x1xf32> -> vector<8x1xf32>
    %68 = arith.mulf %66, %67 : vector<8x1xf32>
    %cst_39 = arith.constant 2.000000e+00 : f32
    %69 = vector.broadcast %cst_39 : f32 to vector<8x1xf32>
    %70 = arith.subf %69, %68 : vector<8x1xf32>
    %71 = arith.mulf %67, %70 : vector<8x1xf32>
    %72 = vector.broadcast %71 : vector<8x1xf32> to vector<8x8xf32>
    %73 = arith.mulf %64, %72 : vector<8x8xf32>
    %c0_40 = arith.constant 0 : index
    %c1 = arith.constant 1 : index
    %c0_41 = arith.constant 0 : index
    %c0_42 = arith.constant 0 : index
    %74 = vector.load %arg14[%c0_40, %c1, %c0_41, %c0_42] : memref<1x4x8x8xf32, #tpu.memory_space<vmem>>, vector<1x1x8x8xf32>
    %75 = vector.shape_cast %74 : vector<1x1x8x8xf32> to vector<8x8xf32>
    %76 = vector.shape_cast %73 : vector<8x8xf32> to vector<1x1x8x8xf32>
    tpu.vector_store %arg14[%c0_40, %c1, %c0_41, %c0_42], %76 {strides = array<i32>} : memref<1x4x8x8xf32, #tpu.memory_space<vmem>>, vector<1x1x8x8xf32>,
    %77 = arith.truncf %73 : vector<8x8xf32> to vector<8x8xbf16>
    %cst_43 = arith.constant dense<0.000000e+00> : vector<8x8xf32>
    %78 = tpu.matmul %77, %56, %cst_43 {dimension_numbers = #tpu.dot_dimension_numbers<[1], [0], [0], [1], [0, 0, 1, 1], [], []>} : vector<8x8xbf16>, vector<8x8xbf16>, vector<8x8xf32> -> vector<8x8xf32>
    %79 = arith.truncf %78 : vector<8x8xf32> to vector<8x8xbf16>
    %c8_44 = arith.constant 8 : index
    %c0_45 = arith.constant 0 : index
    %80 = vector.load %arg9[%c8_44, %c0_45] : memref<32x32xbf16, #tpu.memory_space<vmem>>, vector<8x32xbf16>
    %cst_46 = arith.constant dense<0.000000e+00> : vector<8x32xf32>
    %81 = tpu.matmul %79, %80, %cst_46 {dimension_numbers = #tpu.dot_dimension_numbers<[1], [0], [0], [1], [0, 0, 1, 1], [], []>} : vector<8x8xbf16>, vector<8x32xbf16>, vector<8x32xf32> -> vector<8x32xf32>
    %82 = arith.addf %52, %81 : vector<8x32xf32>
    %83 = vector.extract_strided_slice %14 {offsets = [0, 16], sizes = [8, 8], strides = [1, 1]} : vector<8x32xf32> to vector<8x8xf32>
    %84 = arith.truncf %83 : vector<8x8xf32> to vector<8x8xbf16>
    %c0_47 = arith.constant 0 : index
    %c16 = arith.constant 16 : index
    %85 = vector.load %arg15[%c0_47, %c16] : memref<8x64xbf16, #tpu.memory_space<vmem>>, vector<8x8xbf16>
    %c0_48 = arith.constant 0 : index
    %c48 = arith.constant 48 : index
    %86 = vector.load %arg15[%c0_48, %c48] : memref<8x64xbf16, #tpu.memory_space<vmem>>, vector<8x8xbf16>
    %cst_49 = arith.constant dense<0.000000e+00> : vector<8x8xf32>
    %87 = tpu.matmul %84, %85, %cst_49 {dimension_numbers = #tpu.dot_dimension_numbers<[1], [1], [0], [0], [0, 0, 1, 0], [], []>} : vector<8x8xbf16>, vector<8x8xbf16>, vector<8x8xf32> -> vector<8x8xf32>
    %88 = vector.broadcast %21 : vector<1x8xf32> to vector<8x8xf32>
    %89 = arith.addf %87, %88 : vector<8x8xf32>
    %cst_50 = arith.constant dense<0xFF800000> : vector<8xf32>
    %90 = vector.multi_reduction <maximumf>, %89, %cst_50 [1] : vector<8x8xf32> to vector<8xf32>
    %91 = vector.shape_cast %90 : vector<8xf32> to vector<8x1xf32>
    %92 = vector.broadcast %91 : vector<8x1xf32> to vector<8x8xf32>
    %93 = arith.subf %89, %92 : vector<8x8xf32>
    %94 = math.exp %93 : vector<8x8xf32>
    %cst_51 = arith.constant dense<0.000000e+00> : vector<8xf32>
    %95 = vector.multi_reduction <add>, %94, %cst_51 [1] : vector<8x8xf32> to vector<8xf32>
    %96 = vector.shape_cast %95 : vector<8xf32> to vector<8x1xf32>
    %97 = tpu.reciprocal %96 {approx = true} : vector<8x1xf32> -> vector<8x1xf32>
    %98 = arith.mulf %96, %97 : vector<8x1xf32>
    %cst_52 = arith.constant 2.000000e+00 : f32
    %99 = vector.broadcast %cst_52 : f32 to vector<8x1xf32>
    %100 = arith.subf %99, %98 : vector<8x1xf32>
    %101 = arith.mulf %97, %100 : vector<8x1xf32>
    %102 = vector.broadcast %101 : vector<8x1xf32> to vector<8x8xf32>
    %103 = arith.mulf %94, %102 : vector<8x8xf32>
    %c0_53 = arith.constant 0 : index
    %c2 = arith.constant 2 : index
    %c0_54 = arith.constant 0 : index
    %c0_55 = arith.constant 0 : index
    %104 = vector.load %arg14[%c0_53, %c2, %c0_54, %c0_55] : memref<1x4x8x8xf32, #tpu.memory_space<vmem>>, vector<1x1x8x8xf32>
    %105 = vector.shape_cast %104 : vector<1x1x8x8xf32> to vector<8x8xf32>
    %106 = vector.shape_cast %103 : vector<8x8xf32> to vector<1x1x8x8xf32>
    tpu.vector_store %arg14[%c0_53, %c2, %c0_54, %c0_55], %106 {strides = array<i32>} : memref<1x4x8x8xf32, #tpu.memory_space<vmem>>, vector<1x1x8x8xf32>,
    %107 = arith.truncf %103 : vector<8x8xf32> to vector<8x8xbf16>
    %cst_56 = arith.constant dense<0.000000e+00> : vector<8x8xf32>
    %108 = tpu.matmul %107, %86, %cst_56 {dimension_numbers = #tpu.dot_dimension_numbers<[1], [0], [0], [1], [0, 0, 1, 1], [], []>} : vector<8x8xbf16>, vector<8x8xbf16>, vector<8x8xf32> -> vector<8x8xf32>
    %109 = arith.truncf %108 : vector<8x8xf32> to vector<8x8xbf16>
    %c16_57 = arith.constant 16 : index
    %c0_58 = arith.constant 0 : index
    %110 = vector.load %arg9[%c16_57, %c0_58] : memref<32x32xbf16, #tpu.memory_space<vmem>>, vector<8x32xbf16>
    %cst_59 = arith.constant dense<0.000000e+00> : vector<8x32xf32>
    %111 = tpu.matmul %109, %110, %cst_59 {dimension_numbers = #tpu.dot_dimension_numbers<[1], [0], [0], [1], [0, 0, 1, 1], [], []>} : vector<8x8xbf16>, vector<8x32xbf16>, vector<8x32xf32> -> vector<8x32xf32>
    %112 = arith.addf %82, %111 : vector<8x32xf32>
    %113 = vector.extract_strided_slice %14 {offsets = [0, 24], sizes = [8, 8], strides = [1, 1]} : vector<8x32xf32> to vector<8x8xf32>
    %114 = arith.truncf %113 : vector<8x8xf32> to vector<8x8xbf16>
    %c0_60 = arith.constant 0 : index
    %c24 = arith.constant 24 : index
    %115 = vector.load %arg15[%c0_60, %c24] : memref<8x64xbf16, #tpu.memory_space<vmem>>, vector<8x8xbf16>
    %c0_61 = arith.constant 0 : index
    %c56 = arith.constant 56 : index
    %116 = vector.load %arg15[%c0_61, %c56] : memref<8x64xbf16, #tpu.memory_space<vmem>>, vector<8x8xbf16>
    %cst_62 = arith.constant dense<0.000000e+00> : vector<8x8xf32>
    %117 = tpu.matmul %114, %115, %cst_62 {dimension_numbers = #tpu.dot_dimension_numbers<[1], [1], [0], [0], [0, 0, 1, 0], [], []>} : vector<8x8xbf16>, vector<8x8xbf16>, vector<8x8xf32> -> vector<8x8xf32>
    %118 = vector.broadcast %21 : vector<1x8xf32> to vector<8x8xf32>
    %119 = arith.addf %117, %118 : vector<8x8xf32>
    %cst_63 = arith.constant dense<0xFF800000> : vector<8xf32>
    %120 = vector.multi_reduction <maximumf>, %119, %cst_63 [1] : vector<8x8xf32> to vector<8xf32>
    %121 = vector.shape_cast %120 : vector<8xf32> to vector<8x1xf32>
    %122 = vector.broadcast %121 : vector<8x1xf32> to vector<8x8xf32>
    %123 = arith.subf %119, %122 : vector<8x8xf32>
    %124 = math.exp %123 : vector<8x8xf32>
    %cst_64 = arith.constant dense<0.000000e+00> : vector<8xf32>
    %125 = vector.multi_reduction <add>, %124, %cst_64 [1] : vector<8x8xf32> to vector<8xf32>
    %126 = vector.shape_cast %125 : vector<8xf32> to vector<8x1xf32>
    %127 = tpu.reciprocal %126 {approx = true} : vector<8x1xf32> -> vector<8x1xf32>
    %128 = arith.mulf %126, %127 : vector<8x1xf32>
    %cst_65 = arith.constant 2.000000e+00 : f32
    %129 = vector.broadcast %cst_65 : f32 to vector<8x1xf32>
    %130 = arith.subf %129, %128 : vector<8x1xf32>
    %131 = arith.mulf %127, %130 : vector<8x1xf32>
    %132 = vector.broadcast %131 : vector<8x1xf32> to vector<8x8xf32>
    %133 = arith.mulf %124, %132 : vector<8x8xf32>
    %c0_66 = arith.constant 0 : index
    %c3 = arith.constant 3 : index
    %c0_67 = arith.constant 0 : index
    %c0_68 = arith.constant 0 : index
    %134 = vector.load %arg14[%c0_66, %c3, %c0_67, %c0_68] : memref<1x4x8x8xf32, #tpu.memory_space<vmem>>, vector<1x1x8x8xf32>
    %135 = vector.shape_cast %134 : vector<1x1x8x8xf32> to vector<8x8xf32>
    %136 = vector.shape_cast %133 : vector<8x8xf32> to vector<1x1x8x8xf32>
    tpu.vector_store %arg14[%c0_66, %c3, %c0_67, %c0_68], %136 {strides = array<i32>} : memref<1x4x8x8xf32, #tpu.memory_space<vmem>>, vector<1x1x8x8xf32>,
    %137 = arith.truncf %133 : vector<8x8xf32> to vector<8x8xbf16>
    %cst_69 = arith.constant dense<0.000000e+00> : vector<8x8xf32>
    %138 = tpu.matmul %137, %116, %cst_69 {dimension_numbers = #tpu.dot_dimension_numbers<[1], [0], [0], [1], [0, 0, 1, 1], [], []>} : vector<8x8xbf16>, vector<8x8xbf16>, vector<8x8xf32> -> vector<8x8xf32>
    %139 = arith.truncf %138 : vector<8x8xf32> to vector<8x8xbf16>
    %c24_70 = arith.constant 24 : index
    %c0_71 = arith.constant 0 : index
    %140 = vector.load %arg9[%c24_70, %c0_71] : memref<32x32xbf16, #tpu.memory_space<vmem>>, vector<8x32xbf16>
    %cst_72 = arith.constant dense<0.000000e+00> : vector<8x32xf32>
    %141 = tpu.matmul %139, %140, %cst_72 {dimension_numbers = #tpu.dot_dimension_numbers<[1], [0], [0], [1], [0, 0, 1, 1], [], []>} : vector<8x8xbf16>, vector<8x32xbf16>, vector<8x32xf32> -> vector<8x32xf32>
    %142 = arith.addf %112, %141 : vector<8x32xf32>
    %c0_73 = arith.constant 0 : index
    %c0_74 = arith.constant 0 : index
    %143 = vector.load %arg10[%c0_73, %c0_74] : memref<1x32xf32, #tpu.memory_space<vmem>>, vector<1x32xf32>
    %144 = vector.broadcast %143 : vector<1x32xf32> to vector<8x32xf32>
    %145 = arith.addf %142, %144 : vector<8x32xf32>
    %146 = arith.addf %145, %4 : vector<8x32xf32>
    %cst_75 = arith.constant dense<0.000000e+00> : vector<8xf32>
    %147 = vector.multi_reduction <add>, %146, %cst_75 [1] : vector<8x32xf32> to vector<8xf32>
    %148 = vector.shape_cast %147 : vector<8xf32> to vector<8x1xf32>
    %cst_76 = arith.constant 3.200000e+01 : f32
    %149 = vector.broadcast %cst_76 : f32 to vector<8x1xf32>
    %150 = arith.divf %148, %149 : vector<8x1xf32>
    %151 = vector.broadcast %150 : vector<8x1xf32> to vector<8x32xf32>
    %152 = arith.subf %146, %151 : vector<8x32xf32>
    %153 = arith.mulf %152, %152 : vector<8x32xf32>
    %cst_77 = arith.constant dense<0.000000e+00> : vector<8xf32>
    %154 = vector.multi_reduction <add>, %153, %cst_77 [1] : vector<8x32xf32> to vector<8xf32>
    %155 = vector.shape_cast %154 : vector<8xf32> to vector<8x1xf32>
    %cst_78 = arith.constant 3.200000e+01 : f32
    %156 = vector.broadcast %cst_78 : f32 to vector<8x1xf32>
    %157 = arith.divf %155, %156 : vector<8x1xf32>
    %cst_79 = arith.constant 9.99999974E-6 : f32
    %158 = vector.broadcast %cst_79 : f32 to vector<8x1xf32>
    %159 = arith.addf %157, %158 : vector<8x1xf32>
    %160 = math.rsqrt %159 : vector<8x1xf32>
    %161 = vector.broadcast %160 : vector<8x1xf32> to vector<8x32xf32>
    %162 = arith.mulf %152, %161 : vector<8x32xf32>
    %c0_80 = arith.constant 0 : index
    %c0_81 = arith.constant 0 : index
    %163 = vector.load %arg11[%c0_80, %c0_81] : memref<1x32xf32, #tpu.memory_space<vmem>>, vector<1x32xf32>
    %164 = vector.broadcast %163 : vector<1x32xf32> to vector<8x32xf32>
    %165 = arith.mulf %162, %164 : vector<8x32xf32>
    %c0_82 = arith.constant 0 : index
    %c0_83 = arith.constant 0 : index
    %166 = vector.load %arg12[%c0_82, %c0_83] : memref<1x32xf32, #tpu.memory_space<vmem>>, vector<1x32xf32>
    %167 = vector.broadcast %166 : vector<1x32xf32> to vector<8x32xf32>
    %168 = arith.addf %165, %167 : vector<8x32xf32>
    %c0_84 = arith.constant 0 : index
    %c0_85 = arith.constant 0 : index
    %c0_86 = arith.constant 0 : index
    %169 = vector.load %arg13[%c0_84, %c0_85, %c0_86] : memref<1x8x32xf32, #tpu.memory_space<vmem>>, vector<1x8x32xf32>
    %170 = vector.shape_cast %169 : vector<1x8x32xf32> to vector<8x32xf32>
    %171 = vector.shape_cast %168 : vector<8x32xf32> to vector<1x8x32xf32>
    tpu.vector_store %arg13[%c0_84, %c0_85, %c0_86], %171 {strides = array<i32>} : memref<1x8x32xf32, #tpu.memory_space<vmem>>, vector<1x8x32xf32>,
    return
  }
  func.func @transform_0(%arg0: i32, %arg1: i32) -> (i32, i32, i32) {
    %c0_i32 = arith.constant 0 : i32
    %c0_i32_0 = arith.constant 0 : i32
    return %arg0, %arg1, %c0_i32 : i32, i32, i32
  }
  func.func @transform_1(%arg0: i32, %arg1: i32) -> (i32, i32, i32) {
    %c0_i32 = arith.constant 0 : i32
    %c0_i32_0 = arith.constant 0 : i32
    %c0_i32_1 = arith.constant 0 : i32
    return %arg0, %c0_i32, %c0_i32_0 : i32, i32, i32
  }
  func.func @transform_2(%arg0: i32, %arg1: i32) -> (i32, i32, i32, i32) {
    %c0_i32 = arith.constant 0 : i32
    %c0_i32_0 = arith.constant 0 : i32
    %c0_i32_1 = arith.constant 0 : i32
    %c0_i32_2 = arith.constant 0 : i32
    return %arg0, %c0_i32, %c0_i32_0, %c0_i32_1 : i32, i32, i32, i32
  }
  func.func @transform_3(%arg0: i32, %arg1: i32) -> (i32, i32) {
    %c0_i32 = arith.constant 0 : i32
    %c0_i32_0 = arith.constant 0 : i32
    %c0_i32_1 = arith.constant 0 : i32
    return %c0_i32, %c0_i32_0 : i32, i32
  }
  func.func @transform_4(%arg0: i32, %arg1: i32) -> (i32, i32) {
    %c0_i32 = arith.constant 0 : i32
    %c0_i32_0 = arith.constant 0 : i32
    %c0_i32_1 = arith.constant 0 : i32
    return %c0_i32, %c0_i32_0 : i32, i32
  }
  func.func @transform_5(%arg0: i32, %arg1: i32) -> (i32, i32) {
    %c0_i32 = arith.constant 0 : i32
    %c0_i32_0 = arith.constant 0 : i32
    %c0_i32_1 = arith.constant 0 : i32
    return %c0_i32, %c0_i32_0 : i32, i32
  }
  func.func @transform_6(%arg0: i32, %arg1: i32) -> (i32, i32) {
    %c0_i32 = arith.constant 0 : i32
    %c0_i32_0 = arith.constant 0 : i32
    %c0_i32_1 = arith.constant 0 : i32
    return %c0_i32, %c0_i32_0 : i32, i32
  }
  func.func @transform_7(%arg0: i32, %arg1: i32) -> (i32, i32) {
    %c0_i32 = arith.constant 0 : i32
    %c0_i32_0 = arith.constant 0 : i32
    %c0_i32_1 = arith.constant 0 : i32
    return %c0_i32, %c0_i32_0 : i32, i32
  }
  func.func @transform_8(%arg0: i32, %arg1: i32) -> (i32, i32) {
    %c0_i32 = arith.constant 0 : i32
    %c0_i32_0 = arith.constant 0 : i32
    %c0_i32_1 = arith.constant 0 : i32
    return %c0_i32, %c0_i32_0 : i32, i32
  }
  func.func @transform_9(%arg0: i32, %arg1: i32) -> (i32, i32) {
    %c0_i32 = arith.constant 0 : i32
    %c0_i32_0 = arith.constant 0 : i32
    %c0_i32_1 = arith.constant 0 : i32
    return %c0_i32, %c0_i32_0 : i32, i32
  }
  func.func @transform_10(%arg0: i32, %arg1: i32) -> (i32, i32) {
    %c0_i32 = arith.constant 0 : i32
    %c0_i32_0 = arith.constant 0 : i32
    %c0_i32_1 = arith.constant 0 : i32
    return %c0_i32, %c0_i32_0 : i32, i32
  }
  func.func @transform_11(%arg0: i32, %arg1: i32) -> (i32, i32, i32) {
    %c0_i32 = arith.constant 0 : i32
    %c0_i32_0 = arith.constant 0 : i32
    return %arg0, %arg1, %c0_i32 : i32, i32, i32
  }
  func.func @transform_12(%arg0: i32, %arg1: i32) -> (i32, i32, i32, i32) {
    %c0_i32 = arith.constant 0 : i32
    %c0_i32_0 = arith.constant 0 : i32
    %c0_i32_1 = arith.constant 0 : i32
    return %arg0, %c0_i32, %arg1, %c0_i32_0 : i32, i32, i32, i32
  }
}

</mosaic_0001>

<bundles_post_ra>
// kernel: multi_head_attention.1
= control target key start
LH: loop header
LB: loop body
LE: loop exit
PB: predicated region body
PF: predicated region fallthrough
CT: control target
= control target key end

     0   :  { %s2790_s0 = inlined_call_operand.hbm [shape: f32[2,8,32], index: 0, kind: input, shape index: {}, may-alias: {0,1}]   ;;  %s2791_s1 = inlined_call_operand.hbm [shape: f32[2,8,32], index: 1, kind: input, shape index: {}, may-alias: {0,1}]   ;;  %s2792_s2 = inlined_call_operand.vmem [shape: f32[2,1,1,8], index: 2, kind: input, shape index: {}]   ;;  %s2793_s3 = inlined_call_operand.vmem [shape: bf16[32,32], index: 3, kind: input, shape index: {}]   ;;  %s2794_s4 = inlined_call_operand.vmem [shape: f32[1,32], index: 4, kind: input, shape index: {}]   ;;  %s2795_s5 = inlined_call_operand.hbm [shape: bf16[32,64], index: 5, kind: input, shape index: {}]   ;;  %s2796_s6 = inlined_call_operand.vmem [shape: f32[1,64], index: 6, kind: input, shape index: {}]   ;;  %s2797_s7 = inlined_call_operand.hbm [shape: bf16[32,32], index: 7, kind: input, shape index: {}]   ;;  %s2798_s8 = inlined_call_operand.vmem [shape: f32[1,32], index: 8, kind: input, shape index: {}]   ;;  %s2799_s9 = inlined_call_operand.vmem [shape: f32[1,32], index: 9, kind: input, shape index: {}]   ;;  %s2800_s10 = inlined_call_operand.hbm [shape: f32[1,32], index: 10, kind: input, shape index: {}]   ;;  %s2801_s11 = inlined_call_operand.hbm [shape: f32[2,8,32], index: 11, kind: output, shape index: {0}]   ;;  %s2802_s12 = inlined_call_operand.hbm [shape: f32[2,4,8,8], index: 12, kind: output, shape index: {1}]  }
   0x1   :  { %2812 = sst [smem:[#allocation24_spill]] %s2792_s2 }
   0x2   :  { %2813 = sst [smem:[#allocation25_spill]] %s2795_s5 }
   0x3   :  { %2814 = sst [smem:[#allocation26_spill]] %s2797_s7 }
   0x4   :  { %2815 = sst [smem:[#allocation27_spill]] %s2798_s8 }
   0x5   :  { %2816 = sst [smem:[#allocation28_spill]] %s2799_s9 }
   0x6   :  { %2817 = sst [smem:[#allocation29_spill]] %s2800_s10 }
   0x7   :  { %2818 = sst [smem:[#allocation30_spill]] %s2801_s11 }
   0x8   :  { %2819 = sst [smem:[#allocation31_spill]] %s2802_s12 }
   0x9   :  { %18 = vsyncpa [#allocation4], 0 }
   0xa   :  { %20 = vsyncpa [#allocation4 + $0x1], 0 }
   0xb   :  { %21 = vsyncpa [#allocation7], 0 }
   0xc   :  { %23 = vsyncpa [#allocation7 + $0x1], 0 }
   0xd   :  { %24 = vsyncpa [#allocation10], 0 }
   0xe   :  { %25 = vsyncpa [#allocation5], 0 }
   0xf   :  { %27 = vsyncpa [#allocation5 + $0x1], 0 }
  0x10   :  { %28 = vsyncpa [#allocation14], 0 }
  0x11   :  { %30 = vsyncpa [#allocation14 + $0x1], 0  ;;  %s2301_s21 = smov 0   ;;  %s2303_s22 = smov 0  }
  0x12   :  { %s2305_s23 = smov 0   ;;  %s2307_s24 = smov 0  }
  0x13   :  { %s2309_s25 = smov 0   ;;  %s2311_s26 = smov 0  }
  0x14 LB: > { %2820 = sst [smem:[#allocation21_spill]] %s2194_s21  ;;  %s2332_s27 = sadd.s32 4294967295, %s2214_s26   ;;  %s2214_s26 = sphi %s2311_s26, %s36_s26   ;;  %s2210_s25 = sphi %s2309_s25, %s2855_s25   ;;  %s2206_s24 = sphi %s2307_s24, %s2854_s24   ;;  %s2202_s23 = sphi %s2305_s23, %s2853_s23   ;;  %s2198_s22 = sphi %s2303_s22, %s2852_s22   ;;  %s2194_s21 = sphi %s2301_s21, %s2851_s21  }
  0x15   : > { %2821 = sst [smem:[#allocation22_spill]] %s2206_s24  ;;  %s1628_s28 = sadd.s32 4294967294, %s2214_s26  }
  0x16   : > { %p70_p0 = scmp.ne.s32.totalorder %s2198_s22, %s2194_s21  ;;  %p2806_p1 = scmp.eq.s32.totalorder %s2332_s27, 0 }
  0x17   : > { %p322_p3 = scmp.eq.s32.totalorder %s1628_s28, 1  ;;  %p1629_p5 = scmp.ge.s32.totalorder %s2214_s26, 1 }
  0x18   : > { %p2341_p4 = por %p2806_p1, %p70_p0  ;;  %p357_p7 = scmp.lt.s32.totalorder %s2214_s26, 3 }
  0x19   : > { %p2346_p6 = por %p322_p3, %p70_p0  ;;  %s2216_s14 = smov [#allocation8]  }
  0x1a   : > { %s2822_s29 = scalar_select %p2341_p4, 1, 0 }
  0x1b   : > { %s2823_s30 = scalar_select %p2346_p6, 1, 0 }
  0x1c   : > { %p2351_p8 = pnand %p1629_p5, %p357_p7  ;;  %s375_s15 = sshll.u32 %s2216_s14, 4  ;;  %s2355_s15 = int_to_ptr.vmem [resolvable:$true] %s375_s15 }
  0x1d   : > { %2824 = sst [smem:[#allocation23_spill]] %s2823_s30  ;;  %s2217_s17 = smov [#allocation9]  }
  0x1e   : > { %s2825_s13 = scalar_select %p2351_p8, 1, 0 }
  0x1f   : > { %p1822_p9 = pneg %p2351_p8  ;;  %s391_s18 = sshll.u32 %s2217_s17, 4  ;;  %s2366_s18 = int_to_ptr.vmem [resolvable:$true] %s391_s18 }
  0x20   : > { %s2218_s19 = smov [#allocation11]   ;;  %s2827_s5 = sld [smem:[#allocation25_spill]] }
  0x21   : > { %p2362_p11 = pnand %p1822_p9, %p2806_p1  ;;  %s2368_s20 = sshll.u32 %s2218_s19, 4  ;;  %s412_s20 = int_to_ptr.vmem [resolvable:$true] %s2368_s20 }
  0x23   : > { %p2378_p13 = pneg %p2362_p11 }
  0x26   : > { %s1944_s30 = scalar_lea.hbm %s2827_s5, 256 }
  0x27   : > { %p1945_p12 = scmp.ne.s32.totalorder %s2827_s5, %s1944_s30  ;;  %p1951_p5 = scmp.lt.u32.totalorder %s1944_s30, %s2827_s5 }
  0x29   : > { %p1947_p0 = pnand %p2378_p13, %p1945_p12 }
  0x2b   : > { %p1948_p3 = pneg %p1947_p0 }
  0x2d   : > { %p1953_p7 = pnand %p1951_p5, %p1948_p3 }
  0x2f   : > { %1956 = shalt.err (!%p1953_p7)
}
  0x30   : > { %s1957_s11 = scalar_lea.vmem %s2355_s15, 256  ;;  %p1965_p2 = scmp.lt.s32.totalorder %s2355_s15, %s2355_s15 }
  0x31   : > { %p1958_p9 = scmp.ne.s32.totalorder %s2355_s15, %s1957_s11  ;;  %p1966_p6 = scmp.lt.s32.totalorder %s1957_s11, %s1957_s11 }
  0x33   : > { %p1960_p10 = pnand %p1958_p9, %p2378_p13  ;;  %p1967_p12 = por %p1966_p6, %p1965_p2 }
  0x35   : > { %p1961_p1 = pneg %p1960_p10 }
  0x37   : > { %p1968_p0 = pnand %p1967_p12, %p1961_p1 }
  0x39   : > { %1971 = shalt.err (!%p1968_p0)
}
  0x3a   : > { %s2219_s21 = smov 64   ;;  %s2220_s30 = smov 4  }
  0x3b   : > { %1825 = dma.hbm_to_vmem [thread:$0]  (!%p2362_p11), %s2827_s5, 256, %s2355_s15, [#allocation7], %s2219_s21, %s2219_s21, %s2220_s30  }
  0x3c   : > { %s2829_s7 = sld [smem:[#allocation26_spill]] }
  0x42   : > { %s1972_s12 = scalar_lea.hbm %s2829_s7, 256 }
  0x43   : > { %p1973_p2 = scmp.ne.s32.totalorder %s2829_s7, %s1972_s12  ;;  %p1979_p10 = scmp.lt.u32.totalorder %s1972_s12, %s2829_s7 }
  0x45   : > { %p1975_p1 = pnand %p1973_p2, %p2378_p13 }
  0x47   : > { %p1976_p6 = pneg %p1975_p1 }
  0x49   : > { %p1981_p3 = pnand %p1979_p10, %p1976_p6 }
  0x4b   : > { %1984 = shalt.err (!%p1981_p3)
}
  0x4c   : > { %s1985_s15 = scalar_lea.vmem %s2366_s18, 256  ;;  %p1993_p12 = scmp.lt.s32.totalorder %s2366_s18, %s2366_s18 }
  0x4d   : > { %p1986_p5 = scmp.ne.s32.totalorder %s2366_s18, %s1985_s15  ;;  %p1994_p0 = scmp.lt.s32.totalorder %s1985_s15, %s1985_s15 }
  0x4f   : > { %p1988_p7 = pnand %p1986_p5, %p2378_p13  ;;  %p1995_p2 = por %p1994_p0, %p1993_p12 }
  0x51   : > { %p1989_p9 = pneg %p1988_p7 }
  0x53   : > { %p1996_p1 = pnand %p1995_p2, %p1989_p9 }
  0x55   : > { %1999 = shalt.err (!%p1996_p1)
}
  0x56   : > { %1828 = dma.hbm_to_vmem [thread:$0]  (!%p2362_p11), %s2829_s7, 256, %s2366_s18, [#allocation10], %s2219_s21, %s2219_s21, %s2220_s30  }
  0x57   : > { %s2830_s10 = sld [smem:[#allocation29_spill]] }
  0x5d   : > { %s2000_s28 = scalar_lea.hbm %s2830_s10, 16 }
  0x5e   : > { %p2001_p6 = scmp.ne.s32.totalorder %s2830_s10, %s2000_s28  ;;  %p2007_p5 = scmp.lt.u32.totalorder %s2000_s28, %s2830_s10 }
  0x60   : > { %p2003_p10 = pnand %p2001_p6, %p2378_p13 }
  0x62   : > { %p2004_p3 = pneg %p2003_p10 }
  0x64   : > { %p2009_p7 = pnand %p2007_p5, %p2004_p3 }
  0x66   : > { %2012 = shalt.err (!%p2009_p7)
}
  0x67   : > { %s2013_s15 = scalar_lea.vmem %s412_s20, 16  ;;  %s2020_s18 = scalar_lea.vmem %s412_s20, 32 }
  0x68   : > { %p2014_p9 = scmp.ne.s32.totalorder %s412_s20, %s2013_s15  ;;  %p2021_p2 = scmp.lt.s32.totalorder %s412_s20, %s412_s20 }
  0x69   : > { %p2022_p1 = scmp.lt.s32.totalorder %s2020_s18, %s2013_s15 }
  0x6a   : > { %p2016_p12 = pnand %p2014_p9, %p2378_p13 }
  0x6b   : > { %p2023_p4 = por %p2022_p1, %p2021_p2 }
  0x6c   : > { %p2017_p0 = pneg %p2016_p12 }
  0x6e   : > { %p2024_p8 = pnand %p2023_p4, %p2017_p0 }
  0x70   : > { %2027 = shalt.err (!%p2024_p8)
}
  0x71   : > { %1831 = dma.hbm_to_vmem [thread:$0]  (!%p2362_p11), %s2830_s10, 16, %s412_s20, [#allocation10]  }
  0x72   : > { %s57_s9 = sadd.s32 1, %s2202_s23  ;;  %s48_s2 = sadd.s32 1, %s2210_s25 }
  0x73   : > { %p64_p4 = scmp.ne.s32.totalorder %s2202_s23, %s2198_s22  ;;  %p50_p8 = scmp.ge.s32.totalorder %s48_s2, 2 }
  0x74   : > { %p65_p13 = scmp.eq.s32.totalorder %s2214_s26, 0  ;;  %p2831_p6 = scmp.eq.s32.totalorder %s2332_s27, 1 }
  0x75   : > { %p1849_p3 = scmp.lt.s32.totalorder %s2214_s26, 2  ;;  %s2857_s2 = smov (%p50_p8, %s48_s2), 0 }
  0x76   : > { %p2448_p10 = por %p2831_p6, %p64_p4  ;;  %p66_p5 = por %p65_p13, %p64_p4 }
  0x77   : > { %s422_s8 = sand.u32 1, %s2202_s23   ;;  %s52_s12 = ssub.s32 %s2210_s25, %s2857_s2 }
  0x78   : > { %s2832_s16 = scalar_select %p2448_p10, 1, 0 }
  0x79   : > { %p55_p11 = scmp.eq.s32.totalorder %s52_s12, 0  ;;  %s2458_s20 = sshll.u32 %s422_s8, 3 }
  0x7a   : > { %s1635_s24 = sshll.u32 %s2210_s25, 7  ;;  %s426_s11 = scalar_lea.vmem [#allocation3], %s2458_s20 }
  0x7b   : > { %s2462_s28 = scalar_select %p55_p11, %s2202_s23, %s57_s9  }
  0x7c   : > { %s2467_s19 = scalar_lea.hbm %s2790_s0, %s1635_s24  ;;  %s434_s15 = sshll.u32 %s426_s11, 4  ;;  %s2470_s15 = int_to_ptr.vmem [resolvable:$true] %s434_s15 }
  0x7d   : > { %p2474_p7 = pnand %p1849_p3, %p66_p5  ;;  %s2481_s9 = scalar_lea.hbm %s2791_s1, %s1635_s24 }
  0x7e   : > { %s441_s12 = sand.u32 1, %s2214_s26   ;;  %s423_s14 = scalar_lea.sflag [#allocation4], %s422_s8 }
  0x7f   : > { %s2028_s17 = scalar_lea.hbm %s2467_s19, 128  ;;  %p2030_p12 = pneg %p2474_p7 }
  0x80   : > { %p2029_p9 = scmp.ne.s32.totalorder %s2467_s19, %s2028_s17  ;;  %s2033_s7 = scalar_lea.hbm %s2790_s0, 256 }
  0x81   : > { %p2034_p1 = scmp.lt.u32.totalorder %s2467_s19, %s2790_s0  ;;  %p2035_p4 = scmp.lt.u32.totalorder %s2033_s7, %s2028_s17 }
  0x82   : > { %p2031_p0 = pnand %p2030_p12, %p2029_p9  ;;  %p2037_p13 = scmp.lt.u32.totalorder %s2028_s17, %s2467_s19 }
  0x83   : > { %p2036_p8 = por %p2035_p4, %p2034_p1 }
  0x84   : > { %p2032_p2 = pneg %p2031_p0 }
  0x85   : > { %p2038_p6 = por %p2037_p13, %p2036_p8 }
  0x87   : > { %p2039_p3 = pnand %p2038_p6, %p2032_p2 }
  0x89   : > { %2042 = shalt.err (!%p2039_p3)
}
  0x8a   : > { %s2043_s8 = scalar_lea.vmem %s2470_s15, 128  ;;  %s2221_s5 = smov [#allocation3]  }
  0x8b   : > { %p2044_p5 = scmp.ne.s32.totalorder %s2470_s15, %s2043_s8  ;;  %s2048_s24 = sshll.u32 %s2221_s5, 4  ;;  %s2049_s24 = int_to_ptr.vmem [resolvable:$false] %s2048_s24 }
  0x8c   : > { %s2050_s10 = scalar_lea.vmem %s2049_s24, 256  ;;  %p2051_p0 = scmp.lt.s32.totalorder %s2470_s15, %s2049_s24 }
  0x8d   : > { %p2046_p11 = pnand %p2044_p5, %p2030_p12  ;;  %p2052_p1 = scmp.lt.s32.totalorder %s2050_s10, %s2043_s8 }
  0x8f   : > { %p2047_p9 = pneg %p2046_p11  ;;  %p2053_p4 = por %p2052_p1, %p2051_p0 }
  0x91   : > { %p2054_p8 = pnand %p2053_p4, %p2047_p9 }
  0x93   : > { %2057 = shalt.err (!%p2054_p8)
}
  0x94   : > { %1835 = dma.hbm_to_vmem [thread:$0]  (!%p2474_p7), %s2467_s19, 128, %s2470_s15, %s423_s14  }
  0x95   : > { %s445_s7 = scalar_lea.vmem [#allocation6], %s2458_s20  ;;  %s442_s17 = scalar_lea.sflag [#allocation7], %s441_s12 }
  0x96   : > { %s452_s30 = sshll.u32 %s445_s7, 4  ;;  %s2058_s11 = scalar_lea.hbm %s2481_s9, 128  ;;  %s453_s30 = int_to_ptr.vmem [resolvable:$true] %s452_s30 }
  0x97   : > { %p2059_p2 = scmp.ne.s32.totalorder %s2481_s9, %s2058_s11  ;;  %s2063_s5 = scalar_lea.hbm %s2791_s1, 256 }
  0x98   : > { %p2064_p3 = scmp.lt.u32.totalorder %s2481_s9, %s2791_s1  ;;  %p2065_p5 = scmp.lt.u32.totalorder %s2063_s5, %s2058_s11 }
  0x99   : > { %p2061_p13 = pnand %p2059_p2, %p2030_p12  ;;  %p2067_p9 = scmp.lt.u32.totalorder %s2058_s11, %s2481_s9 }
  0x9a   : > { %p2066_p11 = por %p2065_p5, %p2064_p3 }
  0x9b   : > { %p2062_p6 = pneg %p2061_p13 }
  0x9c   : > { %p2068_p0 = por %p2067_p9, %p2066_p11 }
  0x9e   : > { %p2069_p1 = pnand %p2068_p0, %p2062_p6 }
  0xa0   : > { %2072 = shalt.err (!%p2069_p1)
}
  0xa1   : > { %s2073_s20 = scalar_lea.vmem %s453_s30, 128  ;;  %s2222_s19 = smov [#allocation6]  }
  0xa2   : > { %p2074_p4 = scmp.ne.s32.totalorder %s453_s30, %s2073_s20  ;;  %s2078_s15 = sshll.u32 %s2222_s19, 4  ;;  %s2079_s15 = int_to_ptr.vmem [resolvable:$false] %s2078_s15 }
  0xa3   : > { %s2080_s12 = scalar_lea.vmem %s2079_s15, 256  ;;  %p2081_p13 = scmp.lt.s32.totalorder %s453_s30, %s2079_s15 }
  0xa4   : > { %p2076_p8 = pnand %p2074_p4, %p2030_p12  ;;  %p2082_p10 = scmp.lt.s32.totalorder %s2080_s12, %s2073_s20 }
  0xa6   : > { %p2077_p2 = pneg %p2076_p8  ;;  %p2083_p3 = por %p2082_p10, %p2081_p13 }
  0xa8   : > { %p2084_p5 = pnand %p2083_p3, %p2077_p2 }
  0xaa   : > { %2087 = shalt.err (!%p2084_p5)
}
  0xab   : > { %1838 = dma.hbm_to_vmem [thread:$0]  (!%p2474_p7), %s2481_s9, 128, %s453_s30, %s442_s17  }
  0xac   : > { %p2834_p6 = scmp.ne.s32.totalorder %s2825_s13, 0 }
  0xad   : > { %s2534_s14 = sand.u32 (!%p2834_p6), 1, %s2198_s22   ;;  %p2835_p10 = scmp.ne.s32.totalorder (!%p2834_p6), %s2822_s29, 0 }
  0xae   : > { %467 = sbr.rel (%p2834_p6) target bundleno = 3146 (0xc4a), region = 64  ;;  %s2537_s7 = sshll.u32 (!%p2834_p6), %s2534_s14, 3 }
  0xaf   : > { %s470_s11 = scalar_lea.sflag (!%p2834_p6), [#allocation4], %s2534_s14  ;;  %s473_s21 = scalar_lea.vmem (!%p2834_p6), [#allocation3], %s2537_s7 }
  0xb5   : > { %2169 = dma.done.wait (%p2835_p10), %s470_s11, 128  }
  0xb6   : > { %2171 = vsyncadd (%p2835_p10), %s470_s11, 4294967168  ;;  %s478_s13 = sand.u32 1, %s2332_s27   ;;  %s482_s9 = scalar_lea.vmem [#allocation6], %s2537_s7 }
  0xb7   : > { %s479_s18 = scalar_lea.sflag [#allocation7], %s478_s13 }
  0xb8   : > { %2173 = dma.done.wait (%p2835_p10), %s479_s18, 128  }
  0xb9   : > { %2175 = vsyncadd (%p2835_p10), %s479_s18, 4294967168  ;;  %p2836_p7 = scmp.eq.s32.totalorder %s2332_s27, 0 }
  0xbb   : > { %2177 = dma.done.wait (%p2836_p7), [#allocation7], 256   ;;  %p2837_p12 = pmov %p2836_p7 }
  0xbc   : > { %p2838_p11 = pmov %p2836_p7 }
  0xbd   : > { %2179 = vsyncadd (%p2837_p12), [#allocation7], 4294967040 }
  0xbe   : > { %2181 = dma.done.wait (%p2838_p11), [#allocation10], 272   ;;  %p2839_p9 = pmov %p2836_p7 }
  0xbf   : > { %v2223_v0 = vmov 0.0   ;;  %vm2224_vm0 = vmmov 0   ;;  %v1918_v1 = vld [vmem:[#allocation8] sm:$0xff]   ;;  %v1919_v2 = vld [vmem:[#allocation8 + $0x8] sm:$0xff]   ;;  %v556_v3 = vld [vmem:[%s482_s9] sm:$0xff]  ;;  %vm581_vm1 = vcmask 261120   ;;  %v704_v30 = vlaneseq }
  0xc0   : > { %2183 = vsyncadd (%p2839_p9), [#allocation10], 4294967024  ;;  %1714 = vmatprep.subr.bf16.mxu0 %v2223_v0  ;;  %1718 = vmatprep.mubr.msk.bf16.mxu0 %vm2224_vm0, %v2223_v0  ;;  %v1920_v4 = vld [vmem:[%s2793_s3] sm:$0xff]   ;;  %v557_v5 = vpack.c.bf16 %v556_v3, %v556_v3  ;;  %v1921_v6 = vld [vmem:[%s2793_s3 + $0x8] sm:$0xff]   ;;  %vm626_vm2 = vcmask 519168   ;;  %vm709_vm3 = vcmask 64512  }
  0xc1   : > { %1722 = vmatprep.subr.bf16.mxu1 %v2223_v0  ;;  %1726 = vmatprep.mubr.msk.bf16.mxu1 %vm2224_vm0, %v2223_v0  ;;  %v2572_v7 = vld [vmem:[%s473_s21] sm:$0xff]  ;;  %v1646_v9 = vld [vmem:[%s2796_s6] ss:$0 sm:$0xff]  ;;  %s2840_s20 = sld [smem:[#allocation22_spill]]  ;;  %s2225_s19 = smov 120   ;;  %v705_v32 = vshrl.u32 %v704_v30, 7 }
  0xc2   : > { %1715 = vmatpush3.bf16.msra.mxu0 %v1918_v1  ;;  %1723 = vmatpush3.bf16.msra.mxu1 %v1920_v4  ;;  %v629_v8 = vpack.c.bf16 %v2572_v7, %v2572_v7  ;;  %v1650_v16 = vld [vmem:[%s2794_s4] ss:$0 sm:$0xff]  ;;  %s2841_s21 = sld [smem:[#allocation24_spill]]  ;;  %s2226_s18 = smov 96   ;;  %vm780_vm5 = vcmask 1043456  }
  0xc3   : > { %1716 = vmatprep.subr.bf16.mxu0 %v2223_v0  ;;  %1724 = vmatprep.subr.bf16.mxu1 %v2223_v0  ;;  %v706_v33 = vsub.s32 0, %v705_v32  ;;  %s2227_s9 = smov 88   ;;  %s2228_s27 = smov 112  }
  0xc4   : > { %s1645_s29 = sshll.u32 %s2534_s14, 5  ;;  %s2229_s17 = smov 80  }
  0xc5   : > { %s2630_s30 = scalar_lea.vmem [#allocation13], %s1645_s29  ;;  %s2230_s8 = smov 104  }
  0xc6   : > { %1717 = vmatpush3.bf16.msra.mxu0 %v1919_v2  ;;  %1725 = vmatpush3.bf16.msra.mxu1 %v1921_v6  ;;  %v947_v6 = vld [vmem:[#allocation9 + $0x4] sm:$0xf]  ;;  %s2231_s5 = smov 72   ;;  %s1450_s12 = sshll.u32 %s2630_s30, 4  ;;  %s2706_s12 = int_to_ptr.vmem [resolvable:$true] %s1450_s12 }
  0xc7   : > { %1730 = vmatprep.subr.bf16.mxu0 %v2223_v0  ;;  %1736 = vmatprep.subr.bf16.mxu1 %v2223_v0  ;;  %p548_p0 = scmp.lt.s32.totalorder %s2840_s20, 1  ;;  %p2844_p4 = scmp.ne.s32.totalorder %s2832_s16, 0 }
  0xc8   : > { %s2232_s29 = smov [#allocation13]  }
  0xc9   : > { %1719 = vmatmul.mubr.msk.bf16.vlgmr.msra.gmra.mrb[0].mxu0 %vm581_vm1, %v557_v5  ;;  %1727 = vmatmul.mubr.msk.bf16.vlgmr.msra.gmra.mrb[0].mxu1 %vm581_vm1, %v629_v8  ;;  %s549_s15 = scalar_select %p548_p0, %s2840_s20, 1  ;;  %v952_v8 = vsel %vm780_vm5, %v947_v6, 0 }
  0xca   : > { %1732 = vmatprep.mubr.msk.bf16.mxu0 %vm2224_vm0, %v2223_v0  ;;  %1738 = vmatprep.mubr.msk.bf16.mxu1 %vm2224_vm0, %v2223_v0 }
  0xcb   : > { %s550_s13 = scalar_lea.vmem %s2841_s21, %s549_s15  ;;  %s1683_s15 = sshll.u32 %s2840_s20, 9 }
  0xcc   : > { %v698_v31 = vld [vmem:[%s550_s13] sm:$0x1]  ;;  %s2843_s13 = sld [smem:[#allocation31_spill]] }
  0xcd   : > { %vm699_vm4 = vcmp.eq.f32.partialorder %v698_v31, 0.0 }
  0xce   : > { %v700_v34 = vsel %vm699_vm4, -1e+09, %v2223_v0 }
  0xcf   : > { %v2614_v35 = vrot.slane %v700_v34, %v706_v33 }
 0x19c   : > { %v619_v10 = vpop.f32.mrb[0].mxu0  ;;  %v691_v17 = vpop.f32.mrb[0].mxu1 }
 0x19d   : > { %v620_v11 = vadd.f32 %v1646_v9, %v619_v10  ;;  %v1720_v12 = vpop.f32.mrb[1].mxu0  ;;  %v1728_v18 = vpop.f32.mrb[1].mxu1  ;;  %v692_v20 = vadd.f32 %v1650_v16, %v691_v17  ;;  %v825_v16 = vld [vmem:[#allocation9] sm:$0xf] }
 0x19e   : > { %v622_v13 = vpop.f32.mrb[2].mxu0  ;;  %v694_v19 = vpop.f32.mrb[2].mxu1 }
 0x19f   : > { %v625_v14 = vpack.c.bf16 %v620_v11, %v620_v11  ;;  %v1721_v15 = vpop.f32.mrb[3].mxu0  ;;  %v1729_v21 = vpop.f32.mrb[3].mxu1  ;;  %v697_v22 = vmul.f32 0.35355338, %v692_v20  ;;  %v998_v19 = vsel %vm780_vm5, %v825_v16, 0 }
 0x1a1   : > { %627 = vst.msk [vmem:[#allocation2] sm:$0xf] %vm626_vm2, %v625_v14  ;;  %v2594_v26 = vpack.c.bf16 %v697_v22, %v697_v22 }
 0x1a8   : > { %v702_v23 = vld [vmem:[#allocation2] sm:$0xf] }
 0x1a9   : > { %v2591_v24 = vld [vmem:[#allocation2] ss:$0 sps:$4 sm:$0xff]   ;;  %v714_v25 = vsel %vm709_vm3, %v702_v23, 0  ;;  %v1655_v48 = vcombine.low %v702_v23, %v702_v23 }
 0x1aa   : > { %1731 = vmatpush3.bf16.xpose.msra.mxu0 %v714_v25  ;;  %833 = vrot.lane.b32.xlu0 %v2591_v24, %s2225_s19  ;;  %v2625_v61 = vld [vmem:[#allocation2] ss:$0 sps:$4 sm:$0xff]  }
 0x1ab   : > { %1742 = vmatprep.subr.bf16.mxu0 %v2223_v0 }
 0x1ae   : > { %828 = vrot.lane.b32.xlu0 %v2594_v26, %s2225_s19  ;;  %s2842_s19 = sld [smem:[#allocation27_spill]] }
 0x1b1   : > { %1733 = vmatmul.mubr.msk.bf16.vlgmr.msra.gmra.mrb[4].mxu0 %vm709_vm3, %v2594_v26 }
 0x1b2   : > { %1744 = vmatprep.mubr.msk.bf16.mxu0 %vm2224_vm0, %v2223_v0 }
 0x21c   : > { %v834_v27 = vpop.permute.xlu0 %833 }
 0x21d   : > { %v839_v28 = vsel %vm709_vm3, %v834_v27, 0 }
 0x21e   : > { %1743 = vmatpush3.bf16.xpose.msra.mxu0 %v839_v28 }
 0x21f   : > { %1754 = vmatprep.subr.bf16.mxu0 %v2223_v0 }
 0x220   : > { %v829_v29 = vpop.permute.xlu0 %828 }
 0x225   : > { %1745 = vmatmul.mubr.msk.bf16.vlgmr.msra.gmra.mrb[8].mxu0 %vm709_vm3, %v829_v29 }
 0x226   : > { %1756 = vmatprep.mubr.msk.bf16.mxu0 %vm2224_vm0, %v2223_v0  ;;  %1755 = vmatpush3.bf16.msra.mxu0 %v952_v8 }
 0x227   : > { %1766 = vmatprep.subr.bf16.mxu0 %v2223_v0 }
 0x284   : > { %v750_v36 = vpop.f32.mrb[4].mxu0 }
 0x285   : > { %v751_v37 = vadd.f32 %v750_v36, %v2614_v35  ;;  %v1734_v38 = vpop.f32.mrb[5].mxu0 }
 0x286   : > { %v753_v39 = vpop.f32.mrb[6].mxu0 }
 0x287   : > { %v1735_v40 = vpop.f32.mrb[7].mxu0  ;;  %v756_v41 = vsel %vm709_vm3, %v751_v37, -inf }
 0x288   : > { %757 = vmax.xlane.f32.xlu1 %v756_v41 }
 0x2f8   : > { %v875_v42 = vpop.f32.mrb[8].mxu0 }
 0x2f9   : > { %v876_v43 = vadd.f32 %v875_v42, %v2614_v35  ;;  %v1746_v44 = vpop.f32.mrb[9].mxu0 }
 0x2fa   : > { %v878_v45 = vpop.f32.mrb[10].mxu0 }
 0x2fb   : > { %v1747_v46 = vpop.f32.mrb[11].mxu0  ;;  %v881_v47 = vsel %vm709_vm3, %v876_v43, -inf }
 0x2fc   : > { %882 = vmax.xlane.f32.xlu1 %v881_v47 }
 0x30d   : > { %775 = vrot.lane.b32.xlu1 %v1655_v48, %s2226_s18  ;;  %s2704_s18 = scalar_lea.hbm %s2843_s13, %s1683_s15 }
 0x315   : > { %v758_v49 = vpop.xlane.xlu1 %757 }
 0x316   : > { %v759_v50 = vsub.f32 %v751_v37, %v758_v49 }
 0x318   : > { %v760_v51 = vmul.f32 1.442695, %v759_v50  ;;  %v1925_v50 = vld [vmem:[#allocation2] ss:$0 sps:$4 sm:$0xff]  }
 0x31a   : > { %1926 = vpow2.f32 %v760_v51 }
 0x324   : > { %v1927_v52 = vpop.eup %1926 }
 0x325   : > { %v762_v53 = vsel %vm709_vm3, %v1927_v52, 0.0 }
 0x326   : > { %763 = vadd.xlane.f32.xlu0 %v762_v53 }
 0x389   : > { %v883_v54 = vpop.xlane.xlu1 %882 }
 0x38a   : > { %v884_v55 = vsub.f32 %v876_v43, %v883_v54 }
 0x38c   : > { %v885_v56 = vmul.f32 1.442695, %v884_v55 }
 0x38d   : > { %v776_v57 = vpop.permute.xlu1 %775 }
 0x38e   : > { %1928 = vpow2.f32 %v885_v56  ;;  %v782_v58 = vsel %vm780_vm5, %v776_v57, 0 }
 0x38f   : > { %1737 = vmatpush3.bf16.msra.mxu1 %v782_v58 }
 0x390   : > { %1748 = vmatprep.subr.bf16.mxu1 %v2223_v0 }
 0x398   : > { %v1929_v59 = vpop.eup %1928 }
 0x399   : > { %v887_v60 = vsel %vm709_vm3, %v1929_v59, 0.0 }
 0x39a   : > { %888 = vadd.xlane.f32.xlu1 %v887_v60 }
 0x3ab   : > { %898 = vrot.lane.b32.xlu1 %v2591_v24, %s2227_s9  ;;  %s1422_s9 = scalar_lea.sflag [#allocation14], %s2534_s14 }
 0x3af   : > { %1046 = vrot.lane.b32.xlu1 %v2625_v61, %s2228_s27 }
 0x3b3   : > { %v764_v62 = vpop.xlane.xlu0 %763  ;;  %1041 = vrot.lane.b32.xlu1 %v2594_v26, %s2228_s27  ;;  %s2088_s27 = scalar_lea.vmem %s2706_s12, 512 }
 0x3b4   : > { %1930 = vrcp.f32 %v764_v62  ;;  %p2089_p1 = scmp.ne.s32.totalorder %s2706_s12, %s2088_s27 }
 0x3b6   : > { %p2090_p8 = pnand %p2089_p1, %p2844_p4 }
 0x3b8   : > { %p2091_p2 = pneg %p2090_p8 }
 0x3be   : > { %v1931_v63 = vpop.eup %1930 }
 0x3bf   : > { %v766_v1 = vmul.f32 %v1931_v63, %v764_v62 }
 0x3c1   : > { %v767_v2 = vsub.f32 2.0, %v766_v1 }
 0x3c3   : > { %v768_v3 = vmul.f32 %v1931_v63, %v767_v2 }
 0x3c5   : > { %v769_v4 = vmul.f32 %v1927_v52, %v768_v3 }
 0x3c7   : > { %770 = vst.msk [vmem:[%s2630_s30] sm:$0xff] %vm709_vm3, %v769_v4  ;;  %v771_v5 = vpack.c.bf16 %v769_v4, %v769_v4  ;;  %v1160_v4 = vld [vmem:[#allocation9 + $0x8] sm:$0xf] }
 0x3c9   : > { %1739 = vmatmul.mubr.msk.bf16.vlgmr.msra.gmra.mrb[4].mxu1 %vm709_vm3, %v771_v5  ;;  %v1165_v5 = vsel %vm780_vm5, %v1160_v4, 0 }
 0x3ca   : > { %1750 = vmatprep.mubr.msk.bf16.mxu1 %vm2224_vm0, %v2223_v0 }
 0x427   : > { %v889_v9 = vpop.xlane.xlu1 %888 }
 0x428   : > { %1932 = vrcp.f32 %v889_v9 }
 0x42b   : > { %v899_v10 = vpop.permute.xlu1 %898 }
 0x42c   : > { %v904_v11 = vsel %vm780_vm5, %v899_v10, 0 }
 0x42d   : > { %1749 = vmatpush3.bf16.msra.mxu1 %v904_v11 }
 0x42e   : > { %1760 = vmatprep.subr.bf16.mxu1 %v2223_v0 }
 0x42f   : > { %v1047_v25 = vpop.permute.xlu1 %1046 }
 0x430   : > { %v1052_v31 = vsel %vm709_vm3, %v1047_v25, 0 }
 0x432   : > { %v1933_v12 = vpop.eup %1932 }
 0x433   : > { %v891_v13 = vmul.f32 %v1933_v12, %v889_v9  ;;  %v1042_v33 = vpop.permute.xlu1 %1041 }
 0x435   : > { %v892_v14 = vsub.f32 2.0, %v891_v13 }
 0x437   : > { %v893_v15 = vmul.f32 %v1933_v12, %v892_v14 }
 0x439   : > { %v894_v17 = vmul.f32 %v1929_v59, %v893_v15 }
 0x43b   : > { %1659 = vst.msk [vmem:[%s2630_s30 + $0x8] sm:$0xff] %vm709_vm3, %v894_v17  ;;  %v897_v18 = vpack.c.bf16 %v894_v17, %v894_v17 }
 0x43d   : > { %1751 = vmatmul.mubr.msk.bf16.vlgmr.msra.gmra.mrb[8].mxu1 %vm709_vm3, %v897_v18 }
 0x43e   : > { %1761 = vmatpush3.bf16.msra.mxu1 %v998_v19  ;;  %1762 = vmatprep.mubr.msk.bf16.mxu1 %vm2224_vm0, %v2223_v0 }
 0x43f   : > { %1772 = vmatprep.subr.bf16.mxu1 %v2223_v0 }
 0x49c   : > { %v818_v20 = vpop.f32.mrb[4].mxu1 }
 0x49d   : > { %v824_v21 = vpack.c.bf16 %v818_v20, %v818_v20  ;;  %v1740_v22 = vpop.f32.mrb[5].mxu1 }
 0x49e   : > { %v821_v23 = vpop.f32.mrb[6].mxu1 }
 0x49f   : > { %v1741_v24 = vpop.f32.mrb[7].mxu1  ;;  %1763 = vmatmul.mubr.msk.bf16.vlgmr.msra.gmra.mrb[12].mxu1 %vm709_vm3, %v824_v21 }
 0x4a0   : > { %1774 = vmatprep.mubr.msk.bf16.mxu1 %vm2224_vm0, %v2223_v0 }
 0x510   : > { %v940_v27 = vpop.f32.mrb[8].mxu1 }
 0x511   : > { %v946_v28 = vpack.c.bf16 %v940_v27, %v940_v27  ;;  %v1752_v29 = vpop.f32.mrb[9].mxu1 }
 0x512   : > { %v943_v30 = vpop.f32.mrb[10].mxu1 }
 0x513   : > { %v1753_v32 = vpop.f32.mrb[11].mxu1  ;;  %1757 = vmatmul.mubr.msk.bf16.vlgmr.msra.gmra.mrb[12].mxu0 %vm709_vm3, %v946_v28 }
 0x514   : > { %1767 = vmatpush3.bf16.xpose.msra.mxu0 %v1052_v31  ;;  %1768 = vmatprep.mubr.msk.bf16.mxu0 %vm2224_vm0, %v2223_v0 }
 0x515   : > { %1778 = vmatprep.subr.bf16.mxu0 %v2223_v0 }
 0x51b   : > { %1769 = vmatmul.mubr.msk.bf16.vlgmr.msra.gmra.mrb[16].mxu0 %vm709_vm3, %v1042_v33 }
 0x51c   : > { %1780 = vmatprep.mubr.msk.bf16.mxu0 %vm2224_vm0, %v2223_v0  ;;  %1779 = vmatpush3.bf16.msra.mxu0 %v1165_v5 }
 0x51d   : > { %1790 = vmatprep.subr.bf16.mxu0 %v2223_v0 }
 0x572   : > { %v1034_v34 = vpop.f32.mrb[12].mxu1 }
 0x573   : > { %v1764_v36 = vpop.f32.mrb[13].mxu1 }
 0x574   : > { %v1037_v37 = vpop.f32.mrb[14].mxu1 }
 0x575   : > { %v1765_v38 = vpop.f32.mrb[15].mxu1 }
 0x5e6   : > { %v988_v39 = vpop.f32.mrb[12].mxu0 }
 0x5e7   : > { %v2659_v40 = vadd.f32 %v1034_v34, %v988_v39  ;;  %v1758_v41 = vpop.f32.mrb[13].mxu0 }
 0x5e8   : > { %v991_v42 = vpop.f32.mrb[14].mxu0 }
 0x5e9   : > { %v1759_v43 = vpop.f32.mrb[15].mxu0 }
 0x5ee   : > { %v1088_v44 = vpop.f32.mrb[16].mxu0 }
 0x5ef   : > { %v1089_v45 = vadd.f32 %v1088_v44, %v2614_v35  ;;  %v1770_v46 = vpop.f32.mrb[17].mxu0 }
 0x5f0   : > { %v1091_v47 = vpop.f32.mrb[18].mxu0 }
 0x5f1   : > { %v1771_v48 = vpop.f32.mrb[19].mxu0  ;;  %v1094_v49 = vsel %vm709_vm3, %v1089_v45, -inf }
 0x5f2   : > { %1095 = vmax.xlane.f32.xlu0 %v1094_v49 }
 0x608   : > { %1111 = vrot.lane.b32.xlu0 %v2625_v61, %s2229_s17  ;;  %s2092_s17 = sshll.u32 %s2232_s29, 4  ;;  %s2093_s17 = int_to_ptr.vmem [resolvable:$false] %s2092_s17 }
 0x609   : > { %p2095_p13 = scmp.lt.s32.totalorder %s2706_s12, %s2093_s17 }
 0x60c   : > { %1214 = vrot.lane.b32.xlu0 %v1925_v50, %s2230_s8 }
 0x610   : > { %1209 = vrot.lane.b32.xlu0 %v2594_v26, %s2230_s8 }
 0x67f   : > { %v1096_v51 = vpop.xlane.xlu0 %1095 }
 0x680   : > { %v1097_v52 = vsub.f32 %v1089_v45, %v1096_v51  ;;  %v1673_v45 = vld [vmem:[%s2842_s19] ss:$0 sm:$0xff] }
 0x682   : > { %v1098_v53 = vmul.f32 1.442695, %v1097_v52 }
 0x683   : > { %v1112_v54 = vpop.permute.xlu0 %1111 }
 0x684   : > { %1934 = vpow2.f32 %v1098_v53  ;;  %v1117_v55 = vsel %vm780_vm5, %v1112_v54, 0 }
 0x685   : > { %1773 = vmatpush3.bf16.msra.mxu1 %v1117_v55 }
 0x686   : > { %1784 = vmatprep.subr.bf16.mxu1 %v2223_v0 }
 0x687   : > { %v1215_v63 = vpop.permute.xlu0 %1214 }
 0x688   : > { %v1220_v2 = vsel %vm709_vm3, %v1215_v63, 0 }
 0x68b   : > { %v1210_v3 = vpop.permute.xlu0 %1209 }
 0x68e   : > { %v1935_v56 = vpop.eup %1934 }
 0x68f   : > { %v1100_v57 = vsel %vm709_vm3, %v1935_v56, 0.0 }
 0x690   : > { %1101 = vadd.xlane.f32.xlu1 %v1100_v57 }
 0x71d   : > { %v1102_v58 = vpop.xlane.xlu1 %1101 }
 0x71e   : > { %1936 = vrcp.f32 %v1102_v58 }
 0x728   : > { %v1937_v59 = vpop.eup %1936 }
 0x729   : > { %v1104_v60 = vmul.f32 %v1937_v59, %v1102_v58 }
 0x72b   : > { %v1105_v26 = vsub.f32 2.0, %v1104_v60 }
 0x72d   : > { %v1106_v61 = vmul.f32 %v1937_v59, %v1105_v26 }
 0x72f   : > { %v1107_v62 = vmul.f32 %v1935_v56, %v1106_v61 }
 0x731   : > { %1665 = vst.msk [vmem:[%s2630_s30 + $0x10] sm:$0xff] %vm709_vm3, %v1107_v62  ;;  %v1110_v1 = vpack.c.bf16 %v1107_v62, %v1107_v62 }
 0x733   : > { %1775 = vmatmul.mubr.msk.bf16.vlgmr.msra.gmra.mrb[16].mxu1 %vm709_vm3, %v1110_v1 }
 0x734   : > { %1785 = vmatpush3.bf16.xpose.msra.mxu1 %v1220_v2  ;;  %1786 = vmatprep.mubr.msk.bf16.mxu1 %vm2224_vm0, %v2223_v0 }
 0x735   : > { %1796 = vmatprep.subr.bf16.mxu1 %v2223_v0 }
 0x73b   : > { %1787 = vmatmul.mubr.msk.bf16.vlgmr.msra.gmra.mrb[20].mxu1 %vm709_vm3, %v1210_v3 }
 0x73c   : > { %1798 = vmatprep.mubr.msk.bf16.mxu1 %vm2224_vm0, %v2223_v0 }
 0x806   : > { %v1153_v6 = vpop.f32.mrb[16].mxu1 }
 0x807   : > { %v1159_v8 = vpack.c.bf16 %v1153_v6, %v1153_v6  ;;  %v1776_v9 = vpop.f32.mrb[17].mxu1 }
 0x808   : > { %v1156_v10 = vpop.f32.mrb[18].mxu1 }
 0x809   : > { %v1777_v11 = vpop.f32.mrb[19].mxu1  ;;  %1781 = vmatmul.mubr.msk.bf16.vlgmr.msra.gmra.mrb[20].mxu0 %vm709_vm3, %v1159_v8 }
 0x80a   : > { %1792 = vmatprep.mubr.msk.bf16.mxu0 %vm2224_vm0, %v2223_v0  ;;  %v1328_v0 = vld [vmem:[#allocation9 + $0xc] sm:$0xf] }
 0x80b   : > { %v1333_v23 = vsel %vm780_vm5, %v1328_v0, 0 }
 0x80c   : > { %1797 = vmatpush3.bf16.msra.mxu1 %v1333_v23 }
 0x80e   : > { %v1256_v12 = vpop.f32.mrb[20].mxu1 }
 0x80f   : > { %v1257_v13 = vadd.f32 %v1256_v12, %v2614_v35  ;;  %v1788_v14 = vpop.f32.mrb[21].mxu1 }
 0x810   : > { %v1259_v15 = vpop.f32.mrb[22].mxu1 }
 0x811   : > { %v1789_v16 = vpop.f32.mrb[23].mxu1  ;;  %v1262_v17 = vsel %vm709_vm3, %v1257_v13, -inf }
 0x812   : > { %1263 = vmax.xlane.f32.xlu0 %v1262_v17 }
 0x89f   : > { %v1264_v18 = vpop.xlane.xlu0 %1263 }
 0x8a0   : > { %v1265_v19 = vsub.f32 %v1257_v13, %v1264_v18 }
 0x8a2   : > { %v1266_v20 = vmul.f32 1.442695, %v1265_v19 }
 0x8a4   : > { %1938 = vpow2.f32 %v1266_v20 }
 0x8ae   : > { %v1939_v21 = vpop.eup %1938 }
 0x8af   : > { %v1268_v22 = vsel %vm709_vm3, %v1939_v21, 0.0 }
 0x8b0   : > { %1269 = vadd.xlane.f32.xlu1 %v1268_v22 }
 0x8c1   : > { %1279 = vrot.lane.b32.xlu1 %v1925_v50, %s2231_s5 }
 0x8dc   : > { %v1201_v35 = vpop.f32.mrb[20].mxu0 }
 0x8dd   : > { %v1207_v24 = vadd.f32 %v1201_v35, %v2659_v40  ;;  %v1782_v25 = vpop.f32.mrb[21].mxu0 }
 0x8de   : > { %v1204_v27 = vpop.f32.mrb[22].mxu0 }
 0x8df   : > { %v1783_v28 = vpop.f32.mrb[23].mxu0 }
 0x93d   : > { %v1270_v29 = vpop.xlane.xlu1 %1269 }
 0x93e   : > { %1940 = vrcp.f32 %v1270_v29 }
 0x941   : > { %v1280_v30 = vpop.permute.xlu1 %1279 }
 0x942   : > { %v1285_v31 = vsel %vm780_vm5, %v1280_v30, 0 }
 0x943   : > { %1791 = vmatpush3.bf16.msra.mxu0 %v1285_v31 }
 0x948   : > { %v1941_v32 = vpop.eup %1940 }
 0x949   : > { %v1272_v33 = vmul.f32 %v1941_v32, %v1270_v29 }
 0x94b   : > { %v1273_v34 = vsub.f32 2.0, %v1272_v33 }
 0x94d   : > { %v1274_v36 = vmul.f32 %v1941_v32, %v1273_v34 }
 0x94f   : > { %v1275_v37 = vmul.f32 %v1939_v21, %v1274_v36 }
 0x951   : > { %1670 = vst.msk [vmem:[%s2630_s30 + $0x18] sm:$0xff] %vm709_vm3, %v1275_v37  ;;  %v1278_v38 = vpack.c.bf16 %v1275_v37, %v1275_v37  ;;  %s2094_s30 = scalar_lea.vmem %s2093_s17, 1024 }
 0x952   : > { %p2096_p3 = scmp.lt.s32.totalorder %s2094_s30, %s2088_s27 }
 0x953   : > { %1793 = vmatmul.mubr.msk.bf16.vlgmr.msra.gmra.mrb[24].mxu0 %vm709_vm3, %v1278_v38 }
 0x954   : > { %p2097_p5 = por %p2096_p3, %p2095_p13 }
 0x956   : > { %p2098_p6 = pnand %p2097_p5, %p2091_p2 }
 0xa26   : > { %v1321_v39 = vpop.f32.mrb[24].mxu0 }
 0xa27   : > { %v1327_v40 = vpack.c.bf16 %v1321_v39, %v1321_v39  ;;  %v1794_v41 = vpop.f32.mrb[25].mxu0 }
 0xa28   : > { %v1324_v42 = vpop.f32.mrb[26].mxu0 }
 0xa29   : > { %v1795_v43 = vpop.f32.mrb[27].mxu0  ;;  %1799 = vmatmul.mubr.msk.bf16.vlgmr.msra.gmra.mrb[24].mxu1 %vm709_vm3, %v1327_v40 }
 0xafc   : > { %v1369_v44 = vpop.f32.mrb[24].mxu1 }
 0xafd   : > { %v1375_v46 = vadd.f32 %v1369_v44, %v1207_v24  ;;  %v1800_v47 = vpop.f32.mrb[25].mxu1 }
 0xafe   : > { %v1372_v48 = vpop.f32.mrb[26].mxu1 }
 0xaff   : > { %v1383_v49 = vadd.f32 %v1673_v45, %v1375_v46  ;;  %v1801_v50 = vpop.f32.mrb[27].mxu1 }
 0xb01   : > { %v1384_v51 = vadd.f32 %v1383_v49, %v2572_v7 }
 0xb03   : > { %v1385_v52 = vsel %vm581_vm1, %v1384_v51, 0.0 }
 0xb04   : > { %1386 = vadd.xlane.f32.xlu1 %v1385_v52 }
 0xb91   : > { %v1387_v53 = vpop.xlane.xlu1 %1386 }
 0xb92   : > { %v1389_v54 = vmul.f32 0.03125, %v1387_v53 }
 0xb94   : > { %v1390_v55 = vsub.f32 %v1384_v51, %v1389_v54 }
 0xb96   : > { %v1391_v56 = vmul.f32 %v1390_v55, %v1390_v55 }
 0xb98   : > { %v1392_v57 = vsel %vm581_vm1, %v1391_v56, 0.0 }
 0xb99   : > { %1393 = vadd.xlane.f32.xlu0 %v1392_v57 }
 0xb9a   : > { %2101 = shalt.err (!%p2098_p6)
}
 0xb9b   : > { %s2102_s8 = scalar_lea.hbm %s2704_s18, 512  ;;  %s2106_s10 = scalar_lea.hbm %s2843_s13, 1024 }
 0xb9c   : > { %p2103_p10 = scmp.ne.s32.totalorder %s2704_s18, %s2102_s8  ;;  %p2107_p11 = scmp.lt.u32.totalorder %s2704_s18, %s2843_s13 }
 0xb9d   : > { %p2108_p9 = scmp.lt.u32.totalorder %s2106_s10, %s2102_s8  ;;  %p2110_p1 = scmp.lt.u32.totalorder %s2102_s8, %s2704_s18 }
 0xb9e   : > { %p2104_p7 = pnand %p2103_p10, %p2844_p4 }
 0xb9f   : > { %p2109_p0 = por %p2108_p9, %p2107_p11 }
 0xba0   : > { %p2105_p12 = pneg %p2104_p7 }
 0xba1   : > { %p2111_p8 = por %p2110_p1, %p2109_p0 }
 0xba3   : > { %p2112_p2 = pnand %p2111_p8, %p2105_p12 }
 0xba5   : > { %2115 = shalt.err (!%p2112_p2)
}
 0xba6   : > { %s2233_s11 = smov 128   ;;  %s2234_s21 = smov 8   ;;  %v1675_v62 = vld [vmem:[#allocation11] ss:$0 sm:$0xff] }
 0xba7   : > { %1819 = dma.vmem_to_hbm [thread:$0]  (%p2844_p4), %s2706_s12, 512, %s2704_s18, %s1422_s9, %s2233_s11, %s2233_s11, %s2234_s21  }
 0xba8   : > { %s2845_s17 = sld [smem:[#allocation28_spill]]  ;;  %s1678_s30 = sshll.u32 %s2840_s20, 7 }
 0xba9   : > { %s540_s8 = scalar_lea.vmem [#allocation12], %s2537_s7  ;;  %s2846_s18 = sld [smem:[#allocation30_spill]] }
 0xbaa   : > { %s1436_s5 = sshll.u32 %s540_s8, 4  ;;  %s1417_s10 = scalar_lea.sflag [#allocation5], %s2534_s14  ;;  %s2742_s5 = int_to_ptr.vmem [resolvable:$true] %s1436_s5 }
 0xbab   : > { %s2116_s19 = scalar_lea.vmem %s2742_s5, 128  ;;  %s2235_s7 = smov [#allocation12]  }
 0xbac   : > { %p2117_p13 = scmp.ne.s32.totalorder %s2742_s5, %s2116_s19  ;;  %s2120_s20 = sshll.u32 %s2235_s7, 4  ;;  %s2121_s20 = int_to_ptr.vmem [resolvable:$false] %s2120_s20 }
 0xbad   : > { %s2122_s15 = scalar_lea.vmem %s2121_s20, 256  ;;  %p2123_p6 = scmp.lt.s32.totalorder %s2742_s5, %s2121_s20 }
 0xbae   : > { %v1674_v26 = vld [vmem:[%s2845_s17] ss:$0 sm:$0xff]  ;;  %p2118_p3 = pnand %p2117_p13, %p2844_p4  ;;  %p2124_p10 = scmp.lt.s32.totalorder %s2122_s15, %s2116_s19 }
 0xbaf   : > { %s2740_s9 = scalar_lea.hbm %s2846_s18, %s1678_s30 }
 0xbb0   : > { %p2119_p5 = pneg %p2118_p3  ;;  %p2125_p7 = por %p2124_p10, %p2123_p6 }
 0xbb2   : > { %p2126_p12 = pnand %p2125_p7, %p2119_p5 }
 0xc26   : > { %v1394_v7 = vpop.xlane.xlu0 %1393 }
 0xc27   : > { %v1395_v58 = vmul.f32 0.03125, %v1394_v7 }
 0xc29   : > { %v1396_v59 = vadd.f32 1e-05, %v1395_v58 }
 0xc2b   : > { %1942 = vrsqrt.f32 %v1396_v59 }
 0xc35   : > { %v1943_v60 = vpop.eup %1942 }
 0xc36   : > { %v1398_v61 = vmul.f32 %v1943_v60, %v1390_v55 }
 0xc38   : > { %v1406_v63 = vmul.f32 %v1674_v26, %v1398_v61 }
 0xc3a   : > { %v1414_v1 = vadd.f32 %v1675_v62, %v1406_v63 }
 0xc3c   : > { %1415 = vst.msk [vmem:[%s540_s8] sm:$0xff] %vm581_vm1, %v1414_v1 }
 0xc3d   : > { %2129 = shalt.err (!%p2126_p12)
}
 0xc3e   : > { %s2130_s14 = scalar_lea.hbm %s2740_s9, 128  ;;  %s2134_s27 = scalar_lea.hbm %s2846_s18, 256 }
 0xc3f   : > { %p2131_p11 = scmp.ne.s32.totalorder %s2740_s9, %s2130_s14  ;;  %p2135_p1 = scmp.lt.u32.totalorder %s2740_s9, %s2846_s18 }
 0xc40   : > { %p2136_p8 = scmp.lt.u32.totalorder %s2134_s27, %s2130_s14  ;;  %p2138_p13 = scmp.lt.u32.totalorder %s2130_s14, %s2740_s9 }
 0xc41   : > { %p2132_p9 = pnand %p2131_p11, %p2844_p4 }
 0xc42   : > { %p2137_p2 = por %p2136_p8, %p2135_p1 }
 0xc43   : > { %p2133_p0 = pneg %p2132_p9 }
 0xc44   : > { %p2139_p3 = por %p2138_p13, %p2137_p2 }
 0xc46   : > { %p2140_p5 = pnand %p2139_p3, %p2133_p0 }
 0xc48   : > { %2143 = shalt.err (!%p2140_p5)
}
 0xc49   : > { %1818 = dma.vmem_to_hbm [thread:$0]  (%p2844_p4), %s2742_s5, 128, %s2740_s9, %s1417_s10  }
 0xc4a PF: > { %s2847_s30 = sld [smem:[#allocation21_spill]]  ;;  %s2848_s8 = sld [smem:[#allocation23_spill]] }
 0xc4b   : > { %p2850_p10 = scmp.ge.s32.totalorder %s2214_s26, 2 }
 0xc50   : > { %s1465_s24 = sand.u32 1, %s2847_s30   ;;  %p2849_p6 = scmp.ne.s32.totalorder %s2848_s8, 0 }
 0xc51   : > { %s1466_s12 = scalar_lea.sflag [#allocation5], %s1465_s24 }
 0xc52   : > { %p1840_p7 = pnand %p2850_p10, %p2849_p6 }
 0xc54   : > { %2185 = dma.done.wait (!%p1840_p7), %s1466_s12, 128  }
 0xc55   : > { %2187 = vsyncadd (!%p1840_p7), %s1466_s12, 4294967168  ;;  %s1475_s19 = scalar_lea.sflag [#allocation14], %s1465_s24 }
 0xc56   : > { %2189 = dma.done.wait (!%p1840_p7), %s1475_s19, 512  }
 0xc57   : > { %2191 = vsyncadd (!%p1840_p7), %s1475_s19, 4294966784  ;;  %s36_s26 = sadd.s32 1, %s2214_s26   ;;  %s2851_s21 = smov %s2198_s22 }
 0xc58   : > { %p33_p12 = scmp.ge.s32.totalorder %s36_s26, 4   ;;  %s2852_s22 = smov %s2202_s23 }
 0xc59   : > { %s2853_s23 = smov %s2462_s28  ;;  %s2854_s24 = smov %s2210_s25 }
 0xc5a   : > { %s2855_s25 = smov %s2857_s2  ;;  %35 = sbr.rel (!%p33_p12) target bundleno = 20 (0x14), region = 161 }
 0xc61   :  { %1480 = vsyncpa [#allocation4], 1 }
 0xc62   :  { %1482 = vsyncpa [#allocation4 + $0x1], 1 }
 0xc63   :  { %1483 = vsyncpa [#allocation7], 1 }
 0xc64   :  { %1485 = vsyncpa [#allocation7 + $0x1], 1 }
 0xc65   :  { %1486 = vsyncpa [#allocation10], 1 }
 0xc66   :  { %1487 = vsyncpa [#allocation5], 1 }
 0xc67   :  { %1489 = vsyncpa [#allocation5 + $0x1], 1 }
 0xc68   :  { %1490 = vsyncpa [#allocation14], 1 }
 0xc69   :  { %1492 = vsyncpa [#allocation14 + $0x1], 1 }

</bundles_post_ra>
